<compile_context>
chip_gen: v7x
topology: tpu7x:2x2x1
jax: 0.10.0
libtpu: 0.0.40
codegen_flags: <defaults>
</compile_context>

<pallas_src>
import jax
import jax.numpy as jnp
from jax import lax
from jax.experimental import pallas as pl
from jax.experimental.pallas import tpu as pltpu

KH = KW = 7   # conv2 kernel size
CIN = 128     # conv1 in-channels
C1 = 64       # conv1 out-channels


def _steps_for_batch(B):
    """Split the embarrassingly-parallel batch across TensorCores only on
    multi-TC chips (v4/v5p megacore, v7x). Single-TC v5e/v6e get ONE merged
    grid step so the ~0.35us per-step overhead / DMA ramp is paid once."""
    try:
        kind = jax.devices()[0].device_kind.lower()
    except Exception:
        kind = ""
    n_tc = 2 if any(tag in kind for tag in ("v4", "v5p", "v7", "tpu7")) else 1
    return n_tc if (n_tc > 1 and B % n_tc == 0) else 1


def model_forward(x_nchw, fused_params):
    """x_nchw: (B, CIN, H, W) float32 -> (B, 1, Ho, Wo) float32 of {0.0, 1.0}."""
    w_fused, bias_total = fused_params          # (KH*KW, CIN), (1,)
    B, Cin, H, W = x_nchw.shape
    Ho, Wo = H - KH + 1, W - KW + 1
    HW = H * W
    TAPS = KH * KW

    steps = _steps_for_batch(B)
    Bblk = B // steps

    # Free reshape in HBM (NCHW is contiguous): channels on sublanes, flattened
    # spatial (H*W = 256) on lanes -> lane-dense matmul, no transpose HLO.
    x_flat = x_nchw.reshape(B, Cin, HW)
    # Fold the composed bias into the 0.5 threshold: acc + bias > 0.5  <=>  acc > thresh.
    thresh = (0.5 - bias_total).astype(jnp.float32)        # (1,)

    def kernel(x_ref, wf_ref, thr_ref, o_ref):
        # x_ref : (Bblk, Cin, HW)  VMEM
        # wf_ref: (TAPS, Cin)      VMEM
        # thr_ref: (1,)            SMEM scalar (0.5 - fused bias)
        # o_ref : (Bblk, 1, HW)    VMEM (lane-dense, cropped in the wrapper)
        thr = thr_ref[0]
        w = wf_ref[...]
        for b in range(Bblk):   # Bblk is 1 or 2 -> tiny static unroll
            # Single MXU matmul per batch element: M=TAPS, K=Cin, N=HW (mult. of 128).
            t = jnp.dot(w, x_ref[b], preferred_element_type=jnp.float32)   # (TAPS, HW)

            # conv2 spatial part: out[n] = sum_tap t[tap, n + kh*W + kw].
            # Full 256-lane rows rotated on the XLU keep every add and the final
            # store unmasked; wrap-around lanes only hit positions that the
            # wrapper crops away (max offset 102 + last valid pos 153 = 255 < HW).
            partials = []
            for kh in range(KH):
                p = None
                for kw in range(KW):
                    tap = kh * KW + kw
                    off = kh * W + kw
                    row = t[tap:tap + 1, :]                                # (1, HW)
                    if off:
                        # row'[n] = t[tap, (n + off) mod HW]
                        row = pltpu.roll(row, shift=(HW - off) % HW, axis=1)
                    p = row if p is None else p + row
                partials.append(p)
            # Tree-combine the per-kh partials -> breaks the 49-long serial add chain.
            while len(partials) > 1:
                nxt = [partials[i] + partials[i + 1]
                       for i in range(0, len(partials) - 1, 2)]
                if len(partials) % 2:
                    nxt.append(partials[-1])
                partials = nxt
            acc = partials[0]                                              # (1, HW)

            # v4 = v3 > 0.5 ; v5 = where(v4, 1.0, 0.0)  -> one unmasked lane-dense store.
            o_ref[b] = (acc > thr).astype(o_ref.dtype)

    out = pl.pallas_call(
        kernel,
        out_shape=jax.ShapeDtypeStruct((B, 1, HW), jnp.float32),
        grid_spec=pltpu.PrefetchScalarGridSpec(
            num_scalar_prefetch=0,
            grid=(steps,),   # 1 step on single-TC chips, batch-parallel on multi-TC
            in_specs=[
                pl.BlockSpec((Bblk, Cin, HW), lambda s: (s, 0, 0)),
                pl.BlockSpec((TAPS, Cin), lambda s: (0, 0)),
                pl.BlockSpec(memory_space=pltpu.SMEM),
            ],
            out_specs=pl.BlockSpec((Bblk, 1, HW), lambda s: (s, 0, 0)),
        ),
        compiler_params=pltpu.CompilerParams(
            dimension_semantics=("parallel",)),
    )(x_flat, w_fused, thresh)

    # Crop the lane-dense rows back to the valid conv window -> PyTorch NCHW (B,1,Ho,Wo).
    return out.reshape(B, H, W)[:, :Ho, :Wo].reshape(B, 1, Ho, Wo)


def init_params(key):
    """PyTorch-Conv2d-style (uniform kaiming-like) random parameters."""
    k1, k2, k3, k4 = jax.random.split(key, 4)
    bound1 = 1.0 / (CIN ** 0.5)
    w1 = jax.random.uniform(k1, (C1, CIN), jnp.float32, -bound1, bound1)    # conv1 weight
    b1 = jax.random.uniform(k2, (C1,), jnp.float32, -bound1, bound1)        # conv1 bias
    bound2 = 1.0 / ((C1 * KH * KW) ** 0.5)
    w2 = jax.random.uniform(k3, (1, C1, KH, KW), jnp.float32, -bound2, bound2)  # conv2 weight
    b2 = jax.random.uniform(k4, (1,), jnp.float32, -bound2, bound2)             # conv2 bias
    return w1, b1, w2, b2


def fuse_params(w1, b1, w2, b2):
    # TODO(synk): the original module calls conv1 (128-in) on a 64-channel tensor,
    # which raises a shape error in real PyTorch; as before we emulate the second
    # conv1 with its weight truncated to the first 64 input channels (re-using b1),
    # so the kernel is faithful to that emulation, not to (impossible) PyTorch behavior.
    w1b = w1[:, :C1]                       # (C1, C1)
    A = w1b @ w1                           # (C1, CIN) composed 1x1 convs
    c = w1b @ b1 + b1                      # (C1,)     composed bias
    # conv2 weight as (tap, C1) with tap = kh*KW + kw (cross-correlation, no flip).
    w2_flat = jnp.transpose(w2[0], (1, 2, 0)).reshape(KH * KW, C1)
    w_fused = w2_flat @ A                  # (KH*KW, CIN)
    bias_total = jnp.sum(w2_flat @ c) + b2[0]
    return w_fused, jnp.reshape(bias_total, (1,))


def reference_prethreshold(x, w1, b1, w2, b2):
    """Pure-JAX reference of the 3-conv chain (same truncation emulation)."""
    v1 = jnp.einsum('oc,bchw->bohw', w1, x) + b1[None, :, None, None]
    v2 = jnp.einsum('oc,bchw->bohw', w1[:, :C1], v1) + b1[None, :, None, None]
    v3 = lax.conv_general_dilated(
        v2, w2, window_strides=(1, 1), padding='VALID',
        dimension_numbers=('NCHW', 'OIHW', 'NCHW')) + b2[0]
    return v3


if __name__ == "__main__":
    key = jax.random.PRNGKey(0)
    kx, kp = jax.random.split(key)
    # Module-consistent shapes: batch=2, C=128, spatial=16x16 -> output 10x10
    x = jax.random.normal(kx, (2, CIN, 16, 16), jnp.float32)
    w1, b1, w2, b2 = init_params(kp)
    fused = fuse_params(w1, b1, w2, b2)

    y = model_forward(x, fused)
    jax.block_until_ready(y)
    assert y.shape == (2, 1, 10, 10)

    # Correctness check vs the pure-JAX reference.  Positions whose
    # pre-threshold value sits within 1e-3 of the 0.5 threshold are excluded
    # (f32 associativity drift from the weight fusion could legitimately flip
    # those); everything else must match exactly.
    v3 = reference_prethreshold(x, w1, b1, w2, b2)
    y_ref = jnp.where(v3 > 0.5, 1.0, 0.0)
    stable = jnp.abs(v3 - 0.5) > 1e-3
    ok = jnp.all(jnp.where(stable, y == y_ref, True))
    assert bool(ok), "kernel output does not match reference"

    print("KERNEL_OK")
</pallas_src>

<mosaic_0001>
module attributes {stable_mosaic.version = 11 : i64} {
  func.func @kernel(%arg0: i32, %arg1: memref<2x128x256xf32, #tpu.memory_space<vmem>>, %arg2: memref<49x128xf32, #tpu.memory_space<vmem>>, %arg3: memref<1xf32, #tpu.memory_space<smem>>, %arg4: memref<2x1x256xf32, #tpu.memory_space<vmem>>) attributes {dimension_semantics = [#tpu.dimension_semantics<parallel>], iteration_bounds = array<i64: 1>, scalar_prefetch = 0 : i64, scratch_operands = 0 : i64, tpu.core_type = #tpu.core_type<tc>, window_params = [{transform_indices = @transform_0, window_bounds = array<i64: 2, 128, 256>}, {pipeline_mode = #tpu.pipeline_mode<synchronous>, transform_indices = @transform_1, window_bounds = array<i64: 49, 128>}, {transform_indices = @transform_2, window_bounds = array<i64: 1>}, {transform_indices = @transform_3, window_bounds = array<i64: 2, 1, 256>}]} {
    %c0 = arith.constant 0 : index
    %0 = memref.load %arg3[%c0] : memref<1xf32, #tpu.memory_space<smem>>
    %c0_0 = arith.constant 0 : index
    %c0_1 = arith.constant 0 : index
    %1 = vector.load %arg2[%c0_0, %c0_1] : memref<49x128xf32, #tpu.memory_space<vmem>>, vector<49x128xf32>
    %c0_2 = arith.constant 0 : index
    %c0_3 = arith.constant 0 : index
    %c0_4 = arith.constant 0 : index
    %2 = vector.load %arg1[%c0_2, %c0_3, %c0_4] : memref<2x128x256xf32, #tpu.memory_space<vmem>>, vector<1x128x256xf32>
    %3 = vector.shape_cast %2 : vector<1x128x256xf32> to vector<128x256xf32>
    %cst = arith.constant dense<0.000000e+00> : vector<49x256xf32>
    %4 = tpu.matmul %1, %3, %cst {dimension_numbers = #tpu.dot_dimension_numbers<[1], [0], [0], [1], [0, 0, 1, 1], [], []>} : vector<49x128xf32>, vector<128x256xf32>, vector<49x256xf32> -> vector<49x256xf32>
    %5 = vector.extract_strided_slice %4 {offsets = [0, 0], sizes = [1, 256], strides = [1, 1]} : vector<49x256xf32> to vector<1x256xf32>
    %6 = vector.extract_strided_slice %4 {offsets = [1, 0], sizes = [1, 256], strides = [1, 1]} : vector<49x256xf32> to vector<1x256xf32>
    %c255_i32 = arith.constant 255 : i32
    %7 = tpu.dynamic_rotate %6 by %c255_i32 dim 1 : vector<1x256xf32>, i32 -> vector<1x256xf32>
    %8 = arith.addf %5, %7 : vector<1x256xf32>
    %9 = vector.extract_strided_slice %4 {offsets = [2, 0], sizes = [1, 256], strides = [1, 1]} : vector<49x256xf32> to vector<1x256xf32>
    %c254_i32 = arith.constant 254 : i32
    %10 = tpu.dynamic_rotate %9 by %c254_i32 dim 1 : vector<1x256xf32>, i32 -> vector<1x256xf32>
    %11 = arith.addf %8, %10 : vector<1x256xf32>
    %12 = vector.extract_strided_slice %4 {offsets = [3, 0], sizes = [1, 256], strides = [1, 1]} : vector<49x256xf32> to vector<1x256xf32>
    %c253_i32 = arith.constant 253 : i32
    %13 = tpu.dynamic_rotate %12 by %c253_i32 dim 1 : vector<1x256xf32>, i32 -> vector<1x256xf32>
    %14 = arith.addf %11, %13 : vector<1x256xf32>
    %15 = vector.extract_strided_slice %4 {offsets = [4, 0], sizes = [1, 256], strides = [1, 1]} : vector<49x256xf32> to vector<1x256xf32>
    %c252_i32 = arith.constant 252 : i32
    %16 = tpu.dynamic_rotate %15 by %c252_i32 dim 1 : vector<1x256xf32>, i32 -> vector<1x256xf32>
    %17 = arith.addf %14, %16 : vector<1x256xf32>
    %18 = vector.extract_strided_slice %4 {offsets = [5, 0], sizes = [1, 256], strides = [1, 1]} : vector<49x256xf32> to vector<1x256xf32>
    %c251_i32 = arith.constant 251 : i32
    %19 = tpu.dynamic_rotate %18 by %c251_i32 dim 1 : vector<1x256xf32>, i32 -> vector<1x256xf32>
    %20 = arith.addf %17, %19 : vector<1x256xf32>
    %21 = vector.extract_strided_slice %4 {offsets = [6, 0], sizes = [1, 256], strides = [1, 1]} : vector<49x256xf32> to vector<1x256xf32>
    %c250_i32 = arith.constant 250 : i32
    %22 = tpu.dynamic_rotate %21 by %c250_i32 dim 1 : vector<1x256xf32>, i32 -> vector<1x256xf32>
    %23 = arith.addf %20, %22 : vector<1x256xf32>
    %24 = vector.extract_strided_slice %4 {offsets = [7, 0], sizes = [1, 256], strides = [1, 1]} : vector<49x256xf32> to vector<1x256xf32>
    %c240_i32 = arith.constant 240 : i32
    %25 = tpu.dynamic_rotate %24 by %c240_i32 dim 1 : vector<1x256xf32>, i32 -> vector<1x256xf32>
    %26 = vector.extract_strided_slice %4 {offsets = [8, 0], sizes = [1, 256], strides = [1, 1]} : vector<49x256xf32> to vector<1x256xf32>
    %c239_i32 = arith.constant 239 : i32
    %27 = tpu.dynamic_rotate %26 by %c239_i32 dim 1 : vector<1x256xf32>, i32 -> vector<1x256xf32>
    %28 = arith.addf %25, %27 : vector<1x256xf32>
    %29 = vector.extract_strided_slice %4 {offsets = [9, 0], sizes = [1, 256], strides = [1, 1]} : vector<49x256xf32> to vector<1x256xf32>
    %c238_i32 = arith.constant 238 : i32
    %30 = tpu.dynamic_rotate %29 by %c238_i32 dim 1 : vector<1x256xf32>, i32 -> vector<1x256xf32>
    %31 = arith.addf %28, %30 : vector<1x256xf32>
    %32 = vector.extract_strided_slice %4 {offsets = [10, 0], sizes = [1, 256], strides = [1, 1]} : vector<49x256xf32> to vector<1x256xf32>
    %c237_i32 = arith.constant 237 : i32
    %33 = tpu.dynamic_rotate %32 by %c237_i32 dim 1 : vector<1x256xf32>, i32 -> vector<1x256xf32>
    %34 = arith.addf %31, %33 : vector<1x256xf32>
    %35 = vector.extract_strided_slice %4 {offsets = [11, 0], sizes = [1, 256], strides = [1, 1]} : vector<49x256xf32> to vector<1x256xf32>
    %c236_i32 = arith.constant 236 : i32
    %36 = tpu.dynamic_rotate %35 by %c236_i32 dim 1 : vector<1x256xf32>, i32 -> vector<1x256xf32>
    %37 = arith.addf %34, %36 : vector<1x256xf32>
    %38 = vector.extract_strided_slice %4 {offsets = [12, 0], sizes = [1, 256], strides = [1, 1]} : vector<49x256xf32> to vector<1x256xf32>
    %c235_i32 = arith.constant 235 : i32
    %39 = tpu.dynamic_rotate %38 by %c235_i32 dim 1 : vector<1x256xf32>, i32 -> vector<1x256xf32>
    %40 = arith.addf %37, %39 : vector<1x256xf32>
    %41 = vector.extract_strided_slice %4 {offsets = [13, 0], sizes = [1, 256], strides = [1, 1]} : vector<49x256xf32> to vector<1x256xf32>
    %c234_i32 = arith.constant 234 : i32
    %42 = tpu.dynamic_rotate %41 by %c234_i32 dim 1 : vector<1x256xf32>, i32 -> vector<1x256xf32>
    %43 = arith.addf %40, %42 : vector<1x256xf32>
    %44 = vector.extract_strided_slice %4 {offsets = [14, 0], sizes = [1, 256], strides = [1, 1]} : vector<49x256xf32> to vector<1x256xf32>
    %c224_i32 = arith.constant 224 : i32
    %45 = tpu.dynamic_rotate %44 by %c224_i32 dim 1 : vector<1x256xf32>, i32 -> vector<1x256xf32>
    %46 = vector.extract_strided_slice %4 {offsets = [15, 0], sizes = [1, 256], strides = [1, 1]} : vector<49x256xf32> to vector<1x256xf32>
    %c223_i32 = arith.constant 223 : i32
    %47 = tpu.dynamic_rotate %46 by %c223_i32 dim 1 : vector<1x256xf32>, i32 -> vector<1x256xf32>
    %48 = arith.addf %45, %47 : vector<1x256xf32>
    %49 = vector.extract_strided_slice %4 {offsets = [16, 0], sizes = [1, 256], strides = [1, 1]} : vector<49x256xf32> to vector<1x256xf32>
    %c222_i32 = arith.constant 222 : i32
    %50 = tpu.dynamic_rotate %49 by %c222_i32 dim 1 : vector<1x256xf32>, i32 -> vector<1x256xf32>
    %51 = arith.addf %48, %50 : vector<1x256xf32>
    %52 = vector.extract_strided_slice %4 {offsets = [17, 0], sizes = [1, 256], strides = [1, 1]} : vector<49x256xf32> to vector<1x256xf32>
    %c221_i32 = arith.constant 221 : i32
    %53 = tpu.dynamic_rotate %52 by %c221_i32 dim 1 : vector<1x256xf32>, i32 -> vector<1x256xf32>
    %54 = arith.addf %51, %53 : vector<1x256xf32>
    %55 = vector.extract_strided_slice %4 {offsets = [18, 0], sizes = [1, 256], strides = [1, 1]} : vector<49x256xf32> to vector<1x256xf32>
    %c220_i32 = arith.constant 220 : i32
    %56 = tpu.dynamic_rotate %55 by %c220_i32 dim 1 : vector<1x256xf32>, i32 -> vector<1x256xf32>
    %57 = arith.addf %54, %56 : vector<1x256xf32>
    %58 = vector.extract_strided_slice %4 {offsets = [19, 0], sizes = [1, 256], strides = [1, 1]} : vector<49x256xf32> to vector<1x256xf32>
    %c219_i32 = arith.constant 219 : i32
    %59 = tpu.dynamic_rotate %58 by %c219_i32 dim 1 : vector<1x256xf32>, i32 -> vector<1x256xf32>
    %60 = arith.addf %57, %59 : vector<1x256xf32>
    %61 = vector.extract_strided_slice %4 {offsets = [20, 0], sizes = [1, 256], strides = [1, 1]} : vector<49x256xf32> to vector<1x256xf32>
    %c218_i32 = arith.constant 218 : i32
    %62 = tpu.dynamic_rotate %61 by %c218_i32 dim 1 : vector<1x256xf32>, i32 -> vector<1x256xf32>
    %63 = arith.addf %60, %62 : vector<1x256xf32>
    %64 = vector.extract_strided_slice %4 {offsets = [21, 0], sizes = [1, 256], strides = [1, 1]} : vector<49x256xf32> to vector<1x256xf32>
    %c208_i32 = arith.constant 208 : i32
    %65 = tpu.dynamic_rotate %64 by %c208_i32 dim 1 : vector<1x256xf32>, i32 -> vector<1x256xf32>
    %66 = vector.extract_strided_slice %4 {offsets = [22, 0], sizes = [1, 256], strides = [1, 1]} : vector<49x256xf32> to vector<1x256xf32>
    %c207_i32 = arith.constant 207 : i32
    %67 = tpu.dynamic_rotate %66 by %c207_i32 dim 1 : vector<1x256xf32>, i32 -> vector<1x256xf32>
    %68 = arith.addf %65, %67 : vector<1x256xf32>
    %69 = vector.extract_strided_slice %4 {offsets = [23, 0], sizes = [1, 256], strides = [1, 1]} : vector<49x256xf32> to vector<1x256xf32>
    %c206_i32 = arith.constant 206 : i32
    %70 = tpu.dynamic_rotate %69 by %c206_i32 dim 1 : vector<1x256xf32>, i32 -> vector<1x256xf32>
    %71 = arith.addf %68, %70 : vector<1x256xf32>
    %72 = vector.extract_strided_slice %4 {offsets = [24, 0], sizes = [1, 256], strides = [1, 1]} : vector<49x256xf32> to vector<1x256xf32>
    %c205_i32 = arith.constant 205 : i32
    %73 = tpu.dynamic_rotate %72 by %c205_i32 dim 1 : vector<1x256xf32>, i32 -> vector<1x256xf32>
    %74 = arith.addf %71, %73 : vector<1x256xf32>
    %75 = vector.extract_strided_slice %4 {offsets = [25, 0], sizes = [1, 256], strides = [1, 1]} : vector<49x256xf32> to vector<1x256xf32>
    %c204_i32 = arith.constant 204 : i32
    %76 = tpu.dynamic_rotate %75 by %c204_i32 dim 1 : vector<1x256xf32>, i32 -> vector<1x256xf32>
    %77 = arith.addf %74, %76 : vector<1x256xf32>
    %78 = vector.extract_strided_slice %4 {offsets = [26, 0], sizes = [1, 256], strides = [1, 1]} : vector<49x256xf32> to vector<1x256xf32>
    %c203_i32 = arith.constant 203 : i32
    %79 = tpu.dynamic_rotate %78 by %c203_i32 dim 1 : vector<1x256xf32>, i32 -> vector<1x256xf32>
    %80 = arith.addf %77, %79 : vector<1x256xf32>
    %81 = vector.extract_strided_slice %4 {offsets = [27, 0], sizes = [1, 256], strides = [1, 1]} : vector<49x256xf32> to vector<1x256xf32>
    %c202_i32 = arith.constant 202 : i32
    %82 = tpu.dynamic_rotate %81 by %c202_i32 dim 1 : vector<1x256xf32>, i32 -> vector<1x256xf32>
    %83 = arith.addf %80, %82 : vector<1x256xf32>
    %84 = vector.extract_strided_slice %4 {offsets = [28, 0], sizes = [1, 256], strides = [1, 1]} : vector<49x256xf32> to vector<1x256xf32>
    %c192_i32 = arith.constant 192 : i32
    %85 = tpu.dynamic_rotate %84 by %c192_i32 dim 1 : vector<1x256xf32>, i32 -> vector<1x256xf32>
    %86 = vector.extract_strided_slice %4 {offsets = [29, 0], sizes = [1, 256], strides = [1, 1]} : vector<49x256xf32> to vector<1x256xf32>
    %c191_i32 = arith.constant 191 : i32
    %87 = tpu.dynamic_rotate %86 by %c191_i32 dim 1 : vector<1x256xf32>, i32 -> vector<1x256xf32>
    %88 = arith.addf %85, %87 : vector<1x256xf32>
    %89 = vector.extract_strided_slice %4 {offsets = [30, 0], sizes = [1, 256], strides = [1, 1]} : vector<49x256xf32> to vector<1x256xf32>
    %c190_i32 = arith.constant 190 : i32
    %90 = tpu.dynamic_rotate %89 by %c190_i32 dim 1 : vector<1x256xf32>, i32 -> vector<1x256xf32>
    %91 = arith.addf %88, %90 : vector<1x256xf32>
    %92 = vector.extract_strided_slice %4 {offsets = [31, 0], sizes = [1, 256], strides = [1, 1]} : vector<49x256xf32> to vector<1x256xf32>
    %c189_i32 = arith.constant 189 : i32
    %93 = tpu.dynamic_rotate %92 by %c189_i32 dim 1 : vector<1x256xf32>, i32 -> vector<1x256xf32>
    %94 = arith.addf %91, %93 : vector<1x256xf32>
    %95 = vector.extract_strided_slice %4 {offsets = [32, 0], sizes = [1, 256], strides = [1, 1]} : vector<49x256xf32> to vector<1x256xf32>
    %c188_i32 = arith.constant 188 : i32
    %96 = tpu.dynamic_rotate %95 by %c188_i32 dim 1 : vector<1x256xf32>, i32 -> vector<1x256xf32>
    %97 = arith.addf %94, %96 : vector<1x256xf32>
    %98 = vector.extract_strided_slice %4 {offsets = [33, 0], sizes = [1, 256], strides = [1, 1]} : vector<49x256xf32> to vector<1x256xf32>
    %c187_i32 = arith.constant 187 : i32
    %99 = tpu.dynamic_rotate %98 by %c187_i32 dim 1 : vector<1x256xf32>, i32 -> vector<1x256xf32>
    %100 = arith.addf %97, %99 : vector<1x256xf32>
    %101 = vector.extract_strided_slice %4 {offsets = [34, 0], sizes = [1, 256], strides = [1, 1]} : vector<49x256xf32> to vector<1x256xf32>
    %c186_i32 = arith.constant 186 : i32
    %102 = tpu.dynamic_rotate %101 by %c186_i32 dim 1 : vector<1x256xf32>, i32 -> vector<1x256xf32>
    %103 = arith.addf %100, %102 : vector<1x256xf32>
    %104 = vector.extract_strided_slice %4 {offsets = [35, 0], sizes = [1, 256], strides = [1, 1]} : vector<49x256xf32> to vector<1x256xf32>
    %c176_i32 = arith.constant 176 : i32
    %105 = tpu.dynamic_rotate %104 by %c176_i32 dim 1 : vector<1x256xf32>, i32 -> vector<1x256xf32>
    %106 = vector.extract_strided_slice %4 {offsets = [36, 0], sizes = [1, 256], strides = [1, 1]} : vector<49x256xf32> to vector<1x256xf32>
    %c175_i32 = arith.constant 175 : i32
    %107 = tpu.dynamic_rotate %106 by %c175_i32 dim 1 : vector<1x256xf32>, i32 -> vector<1x256xf32>
    %108 = arith.addf %105, %107 : vector<1x256xf32>
    %109 = vector.extract_strided_slice %4 {offsets = [37, 0], sizes = [1, 256], strides = [1, 1]} : vector<49x256xf32> to vector<1x256xf32>
    %c174_i32 = arith.constant 174 : i32
    %110 = tpu.dynamic_rotate %109 by %c174_i32 dim 1 : vector<1x256xf32>, i32 -> vector<1x256xf32>
    %111 = arith.addf %108, %110 : vector<1x256xf32>
    %112 = vector.extract_strided_slice %4 {offsets = [38, 0], sizes = [1, 256], strides = [1, 1]} : vector<49x256xf32> to vector<1x256xf32>
    %c173_i32 = arith.constant 173 : i32
    %113 = tpu.dynamic_rotate %112 by %c173_i32 dim 1 : vector<1x256xf32>, i32 -> vector<1x256xf32>
    %114 = arith.addf %111, %113 : vector<1x256xf32>
    %115 = vector.extract_strided_slice %4 {offsets = [39, 0], sizes = [1, 256], strides = [1, 1]} : vector<49x256xf32> to vector<1x256xf32>
    %c172_i32 = arith.constant 172 : i32
    %116 = tpu.dynamic_rotate %115 by %c172_i32 dim 1 : vector<1x256xf32>, i32 -> vector<1x256xf32>
    %117 = arith.addf %114, %116 : vector<1x256xf32>
    %118 = vector.extract_strided_slice %4 {offsets = [40, 0], sizes = [1, 256], strides = [1, 1]} : vector<49x256xf32> to vector<1x256xf32>
    %c171_i32 = arith.constant 171 : i32
    %119 = tpu.dynamic_rotate %118 by %c171_i32 dim 1 : vector<1x256xf32>, i32 -> vector<1x256xf32>
    %120 = arith.addf %117, %119 : vector<1x256xf32>
    %121 = vector.extract_strided_slice %4 {offsets = [41, 0], sizes = [1, 256], strides = [1, 1]} : vector<49x256xf32> to vector<1x256xf32>
    %c170_i32 = arith.constant 170 : i32
    %122 = tpu.dynamic_rotate %121 by %c170_i32 dim 1 : vector<1x256xf32>, i32 -> vector<1x256xf32>
    %123 = arith.addf %120, %122 : vector<1x256xf32>
    %124 = vector.extract_strided_slice %4 {offsets = [42, 0], sizes = [1, 256], strides = [1, 1]} : vector<49x256xf32> to vector<1x256xf32>
    %c160_i32 = arith.constant 160 : i32
    %125 = tpu.dynamic_rotate %124 by %c160_i32 dim 1 : vector<1x256xf32>, i32 -> vector<1x256xf32>
    %126 = vector.extract_strided_slice %4 {offsets = [43, 0], sizes = [1, 256], strides = [1, 1]} : vector<49x256xf32> to vector<1x256xf32>
    %c159_i32 = arith.constant 159 : i32
    %127 = tpu.dynamic_rotate %126 by %c159_i32 dim 1 : vector<1x256xf32>, i32 -> vector<1x256xf32>
    %128 = arith.addf %125, %127 : vector<1x256xf32>
    %129 = vector.extract_strided_slice %4 {offsets = [44, 0], sizes = [1, 256], strides = [1, 1]} : vector<49x256xf32> to vector<1x256xf32>
    %c158_i32 = arith.constant 158 : i32
    %130 = tpu.dynamic_rotate %129 by %c158_i32 dim 1 : vector<1x256xf32>, i32 -> vector<1x256xf32>
    %131 = arith.addf %128, %130 : vector<1x256xf32>
    %132 = vector.extract_strided_slice %4 {offsets = [45, 0], sizes = [1, 256], strides = [1, 1]} : vector<49x256xf32> to vector<1x256xf32>
    %c157_i32 = arith.constant 157 : i32
    %133 = tpu.dynamic_rotate %132 by %c157_i32 dim 1 : vector<1x256xf32>, i32 -> vector<1x256xf32>
    %134 = arith.addf %131, %133 : vector<1x256xf32>
    %135 = vector.extract_strided_slice %4 {offsets = [46, 0], sizes = [1, 256], strides = [1, 1]} : vector<49x256xf32> to vector<1x256xf32>
    %c156_i32 = arith.constant 156 : i32
    %136 = tpu.dynamic_rotate %135 by %c156_i32 dim 1 : vector<1x256xf32>, i32 -> vector<1x256xf32>
    %137 = arith.addf %134, %136 : vector<1x256xf32>
    %138 = vector.extract_strided_slice %4 {offsets = [47, 0], sizes = [1, 256], strides = [1, 1]} : vector<49x256xf32> to vector<1x256xf32>
    %c155_i32 = arith.constant 155 : i32
    %139 = tpu.dynamic_rotate %138 by %c155_i32 dim 1 : vector<1x256xf32>, i32 -> vector<1x256xf32>
    %140 = arith.addf %137, %139 : vector<1x256xf32>
    %141 = vector.extract_strided_slice %4 {offsets = [48, 0], sizes = [1, 256], strides = [1, 1]} : vector<49x256xf32> to vector<1x256xf32>
    %c154_i32 = arith.constant 154 : i32
    %142 = tpu.dynamic_rotate %141 by %c154_i32 dim 1 : vector<1x256xf32>, i32 -> vector<1x256xf32>
    %143 = arith.addf %140, %142 : vector<1x256xf32>
    %144 = arith.addf %23, %43 : vector<1x256xf32>
    %145 = arith.addf %63, %83 : vector<1x256xf32>
    %146 = arith.addf %103, %123 : vector<1x256xf32>
    %147 = arith.addf %144, %145 : vector<1x256xf32>
    %148 = arith.addf %146, %143 : vector<1x256xf32>
    %149 = arith.addf %147, %148 : vector<1x256xf32>
    %150 = vector.broadcast %0 : f32 to vector<1x256xf32>
    %151 = arith.cmpf ogt, %149, %150 : vector<1x256xf32>
    %152 = arith.extui %151 : vector<1x256xi1> to vector<1x256xi32>
    %153 = arith.sitofp %152 : vector<1x256xi32> to vector<1x256xf32>
    %c0_5 = arith.constant 0 : index
    %c0_6 = arith.constant 0 : index
    %c0_7 = arith.constant 0 : index
    %154 = vector.load %arg4[%c0_5, %c0_6, %c0_7] : memref<2x1x256xf32, #tpu.memory_space<vmem>>, vector<1x1x256xf32>
    %155 = vector.shape_cast %154 : vector<1x1x256xf32> to vector<1x256xf32>
    %156 = vector.shape_cast %153 : vector<1x256xf32> to vector<1x1x256xf32>
    tpu.vector_store %arg4[%c0_5, %c0_6, %c0_7], %156 {strides = array<i32>} : memref<2x1x256xf32, #tpu.memory_space<vmem>>, vector<1x1x256xf32>,
    %c1 = arith.constant 1 : index
    %c0_8 = arith.constant 0 : index
    %c0_9 = arith.constant 0 : index
    %157 = vector.load %arg1[%c1, %c0_8, %c0_9] : memref<2x128x256xf32, #tpu.memory_space<vmem>>, vector<1x128x256xf32>
    %158 = vector.shape_cast %157 : vector<1x128x256xf32> to vector<128x256xf32>
    %cst_10 = arith.constant dense<0.000000e+00> : vector<49x256xf32>
    %159 = tpu.matmul %1, %158, %cst_10 {dimension_numbers = #tpu.dot_dimension_numbers<[1], [0], [0], [1], [0, 0, 1, 1], [], []>} : vector<49x128xf32>, vector<128x256xf32>, vector<49x256xf32> -> vector<49x256xf32>
    %160 = vector.extract_strided_slice %159 {offsets = [0, 0], sizes = [1, 256], strides = [1, 1]} : vector<49x256xf32> to vector<1x256xf32>
    %161 = vector.extract_strided_slice %159 {offsets = [1, 0], sizes = [1, 256], strides = [1, 1]} : vector<49x256xf32> to vector<1x256xf32>
    %c255_i32_11 = arith.constant 255 : i32
    %162 = tpu.dynamic_rotate %161 by %c255_i32_11 dim 1 : vector<1x256xf32>, i32 -> vector<1x256xf32>
    %163 = arith.addf %160, %162 : vector<1x256xf32>
    %164 = vector.extract_strided_slice %159 {offsets = [2, 0], sizes = [1, 256], strides = [1, 1]} : vector<49x256xf32> to vector<1x256xf32>
    %c254_i32_12 = arith.constant 254 : i32
    %165 = tpu.dynamic_rotate %164 by %c254_i32_12 dim 1 : vector<1x256xf32>, i32 -> vector<1x256xf32>
    %166 = arith.addf %163, %165 : vector<1x256xf32>
    %167 = vector.extract_strided_slice %159 {offsets = [3, 0], sizes = [1, 256], strides = [1, 1]} : vector<49x256xf32> to vector<1x256xf32>
    %c253_i32_13 = arith.constant 253 : i32
    %168 = tpu.dynamic_rotate %167 by %c253_i32_13 dim 1 : vector<1x256xf32>, i32 -> vector<1x256xf32>
    %169 = arith.addf %166, %168 : vector<1x256xf32>
    %170 = vector.extract_strided_slice %159 {offsets = [4, 0], sizes = [1, 256], strides = [1, 1]} : vector<49x256xf32> to vector<1x256xf32>
    %c252_i32_14 = arith.constant 252 : i32
    %171 = tpu.dynamic_rotate %170 by %c252_i32_14 dim 1 : vector<1x256xf32>, i32 -> vector<1x256xf32>
    %172 = arith.addf %169, %171 : vector<1x256xf32>
    %173 = vector.extract_strided_slice %159 {offsets = [5, 0], sizes = [1, 256], strides = [1, 1]} : vector<49x256xf32> to vector<1x256xf32>
    %c251_i32_15 = arith.constant 251 : i32
    %174 = tpu.dynamic_rotate %173 by %c251_i32_15 dim 1 : vector<1x256xf32>, i32 -> vector<1x256xf32>
    %175 = arith.addf %172, %174 : vector<1x256xf32>
    %176 = vector.extract_strided_slice %159 {offsets = [6, 0], sizes = [1, 256], strides = [1, 1]} : vector<49x256xf32> to vector<1x256xf32>
    %c250_i32_16 = arith.constant 250 : i32
    %177 = tpu.dynamic_rotate %176 by %c250_i32_16 dim 1 : vector<1x256xf32>, i32 -> vector<1x256xf32>
    %178 = arith.addf %175, %177 : vector<1x256xf32>
    %179 = vector.extract_strided_slice %159 {offsets = [7, 0], sizes = [1, 256], strides = [1, 1]} : vector<49x256xf32> to vector<1x256xf32>
    %c240_i32_17 = arith.constant 240 : i32
    %180 = tpu.dynamic_rotate %179 by %c240_i32_17 dim 1 : vector<1x256xf32>, i32 -> vector<1x256xf32>
    %181 = vector.extract_strided_slice %159 {offsets = [8, 0], sizes = [1, 256], strides = [1, 1]} : vector<49x256xf32> to vector<1x256xf32>
    %c239_i32_18 = arith.constant 239 : i32
    %182 = tpu.dynamic_rotate %181 by %c239_i32_18 dim 1 : vector<1x256xf32>, i32 -> vector<1x256xf32>
    %183 = arith.addf %180, %182 : vector<1x256xf32>
    %184 = vector.extract_strided_slice %159 {offsets = [9, 0], sizes = [1, 256], strides = [1, 1]} : vector<49x256xf32> to vector<1x256xf32>
    %c238_i32_19 = arith.constant 238 : i32
    %185 = tpu.dynamic_rotate %184 by %c238_i32_19 dim 1 : vector<1x256xf32>, i32 -> vector<1x256xf32>
    %186 = arith.addf %183, %185 : vector<1x256xf32>
    %187 = vector.extract_strided_slice %159 {offsets = [10, 0], sizes = [1, 256], strides = [1, 1]} : vector<49x256xf32> to vector<1x256xf32>
    %c237_i32_20 = arith.constant 237 : i32
    %188 = tpu.dynamic_rotate %187 by %c237_i32_20 dim 1 : vector<1x256xf32>, i32 -> vector<1x256xf32>
    %189 = arith.addf %186, %188 : vector<1x256xf32>
    %190 = vector.extract_strided_slice %159 {offsets = [11, 0], sizes = [1, 256], strides = [1, 1]} : vector<49x256xf32> to vector<1x256xf32>
    %c236_i32_21 = arith.constant 236 : i32
    %191 = tpu.dynamic_rotate %190 by %c236_i32_21 dim 1 : vector<1x256xf32>, i32 -> vector<1x256xf32>
    %192 = arith.addf %189, %191 : vector<1x256xf32>
    %193 = vector.extract_strided_slice %159 {offsets = [12, 0], sizes = [1, 256], strides = [1, 1]} : vector<49x256xf32> to vector<1x256xf32>
    %c235_i32_22 = arith.constant 235 : i32
    %194 = tpu.dynamic_rotate %193 by %c235_i32_22 dim 1 : vector<1x256xf32>, i32 -> vector<1x256xf32>
    %195 = arith.addf %192, %194 : vector<1x256xf32>
    %196 = vector.extract_strided_slice %159 {offsets = [13, 0], sizes = [1, 256], strides = [1, 1]} : vector<49x256xf32> to vector<1x256xf32>
    %c234_i32_23 = arith.constant 234 : i32
    %197 = tpu.dynamic_rotate %196 by %c234_i32_23 dim 1 : vector<1x256xf32>, i32 -> vector<1x256xf32>
    %198 = arith.addf %195, %197 : vector<1x256xf32>
    %199 = vector.extract_strided_slice %159 {offsets = [14, 0], sizes = [1, 256], strides = [1, 1]} : vector<49x256xf32> to vector<1x256xf32>
    %c224_i32_24 = arith.constant 224 : i32
    %200 = tpu.dynamic_rotate %199 by %c224_i32_24 dim 1 : vector<1x256xf32>, i32 -> vector<1x256xf32>
    %201 = vector.extract_strided_slice %159 {offsets = [15, 0], sizes = [1, 256], strides = [1, 1]} : vector<49x256xf32> to vector<1x256xf32>
    %c223_i32_25 = arith.constant 223 : i32
    %202 = tpu.dynamic_rotate %201 by %c223_i32_25 dim 1 : vector<1x256xf32>, i32 -> vector<1x256xf32>
    %203 = arith.addf %200, %202 : vector<1x256xf32>
    %204 = vector.extract_strided_slice %159 {offsets = [16, 0], sizes = [1, 256], strides = [1, 1]} : vector<49x256xf32> to vector<1x256xf32>
    %c222_i32_26 = arith.constant 222 : i32
    %205 = tpu.dynamic_rotate %204 by %c222_i32_26 dim 1 : vector<1x256xf32>, i32 -> vector<1x256xf32>
    %206 = arith.addf %203, %205 : vector<1x256xf32>
    %207 = vector.extract_strided_slice %159 {offsets = [17, 0], sizes = [1, 256], strides = [1, 1]} : vector<49x256xf32> to vector<1x256xf32>
    %c221_i32_27 = arith.constant 221 : i32
    %208 = tpu.dynamic_rotate %207 by %c221_i32_27 dim 1 : vector<1x256xf32>, i32 -> vector<1x256xf32>
    %209 = arith.addf %206, %208 : vector<1x256xf32>
    %210 = vector.extract_strided_slice %159 {offsets = [18, 0], sizes = [1, 256], strides = [1, 1]} : vector<49x256xf32> to vector<1x256xf32>
    %c220_i32_28 = arith.constant 220 : i32
    %211 = tpu.dynamic_rotate %210 by %c220_i32_28 dim 1 : vector<1x256xf32>, i32 -> vector<1x256xf32>
    %212 = arith.addf %209, %211 : vector<1x256xf32>
    %213 = vector.extract_strided_slice %159 {offsets = [19, 0], sizes = [1, 256], strides = [1, 1]} : vector<49x256xf32> to vector<1x256xf32>
    %c219_i32_29 = arith.constant 219 : i32
    %214 = tpu.dynamic_rotate %213 by %c219_i32_29 dim 1 : vector<1x256xf32>, i32 -> vector<1x256xf32>
    %215 = arith.addf %212, %214 : vector<1x256xf32>
    %216 = vector.extract_strided_slice %159 {offsets = [20, 0], sizes = [1, 256], strides = [1, 1]} : vector<49x256xf32> to vector<1x256xf32>
    %c218_i32_30 = arith.constant 218 : i32
    %217 = tpu.dynamic_rotate %216 by %c218_i32_30 dim 1 : vector<1x256xf32>, i32 -> vector<1x256xf32>
    %218 = arith.addf %215, %217 : vector<1x256xf32>
    %219 = vector.extract_strided_slice %159 {offsets = [21, 0], sizes = [1, 256], strides = [1, 1]} : vector<49x256xf32> to vector<1x256xf32>
    %c208_i32_31 = arith.constant 208 : i32
    %220 = tpu.dynamic_rotate %219 by %c208_i32_31 dim 1 : vector<1x256xf32>, i32 -> vector<1x256xf32>
    %221 = vector.extract_strided_slice %159 {offsets = [22, 0], sizes = [1, 256], strides = [1, 1]} : vector<49x256xf32> to vector<1x256xf32>
    %c207_i32_32 = arith.constant 207 : i32
    %222 = tpu.dynamic_rotate %221 by %c207_i32_32 dim 1 : vector<1x256xf32>, i32 -> vector<1x256xf32>
    %223 = arith.addf %220, %222 : vector<1x256xf32>
    %224 = vector.extract_strided_slice %159 {offsets = [23, 0], sizes = [1, 256], strides = [1, 1]} : vector<49x256xf32> to vector<1x256xf32>
    %c206_i32_33 = arith.constant 206 : i32
    %225 = tpu.dynamic_rotate %224 by %c206_i32_33 dim 1 : vector<1x256xf32>, i32 -> vector<1x256xf32>
    %226 = arith.addf %223, %225 : vector<1x256xf32>
    %227 = vector.extract_strided_slice %159 {offsets = [24, 0], sizes = [1, 256], strides = [1, 1]} : vector<49x256xf32> to vector<1x256xf32>
    %c205_i32_34 = arith.constant 205 : i32
    %228 = tpu.dynamic_rotate %227 by %c205_i32_34 dim 1 : vector<1x256xf32>, i32 -> vector<1x256xf32>
    %229 = arith.addf %226, %228 : vector<1x256xf32>
    %230 = vector.extract_strided_slice %159 {offsets = [25, 0], sizes = [1, 256], strides = [1, 1]} : vector<49x256xf32> to vector<1x256xf32>
    %c204_i32_35 = arith.constant 204 : i32
    %231 = tpu.dynamic_rotate %230 by %c204_i32_35 dim 1 : vector<1x256xf32>, i32 -> vector<1x256xf32>
    %232 = arith.addf %229, %231 : vector<1x256xf32>
    %233 = vector.extract_strided_slice %159 {offsets = [26, 0], sizes = [1, 256], strides = [1, 1]} : vector<49x256xf32> to vector<1x256xf32>
    %c203_i32_36 = arith.constant 203 : i32
    %234 = tpu.dynamic_rotate %233 by %c203_i32_36 dim 1 : vector<1x256xf32>, i32 -> vector<1x256xf32>
    %235 = arith.addf %232, %234 : vector<1x256xf32>
    %236 = vector.extract_strided_slice %159 {offsets = [27, 0], sizes = [1, 256], strides = [1, 1]} : vector<49x256xf32> to vector<1x256xf32>
    %c202_i32_37 = arith.constant 202 : i32
    %237 = tpu.dynamic_rotate %236 by %c202_i32_37 dim 1 : vector<1x256xf32>, i32 -> vector<1x256xf32>
    %238 = arith.addf %235, %237 : vector<1x256xf32>
    %239 = vector.extract_strided_slice %159 {offsets = [28, 0], sizes = [1, 256], strides = [1, 1]} : vector<49x256xf32> to vector<1x256xf32>
    %c192_i32_38 = arith.constant 192 : i32
    %240 = tpu.dynamic_rotate %239 by %c192_i32_38 dim 1 : vector<1x256xf32>, i32 -> vector<1x256xf32>
    %241 = vector.extract_strided_slice %159 {offsets = [29, 0], sizes = [1, 256], strides = [1, 1]} : vector<49x256xf32> to vector<1x256xf32>
    %c191_i32_39 = arith.constant 191 : i32
    %242 = tpu.dynamic_rotate %241 by %c191_i32_39 dim 1 : vector<1x256xf32>, i32 -> vector<1x256xf32>
    %243 = arith.addf %240, %242 : vector<1x256xf32>
    %244 = vector.extract_strided_slice %159 {offsets = [30, 0], sizes = [1, 256], strides = [1, 1]} : vector<49x256xf32> to vector<1x256xf32>
    %c190_i32_40 = arith.constant 190 : i32
    %245 = tpu.dynamic_rotate %244 by %c190_i32_40 dim 1 : vector<1x256xf32>, i32 -> vector<1x256xf32>
    %246 = arith.addf %243, %245 : vector<1x256xf32>
    %247 = vector.extract_strided_slice %159 {offsets = [31, 0], sizes = [1, 256], strides = [1, 1]} : vector<49x256xf32> to vector<1x256xf32>
    %c189_i32_41 = arith.constant 189 : i32
    %248 = tpu.dynamic_rotate %247 by %c189_i32_41 dim 1 : vector<1x256xf32>, i32 -> vector<1x256xf32>
    %249 = arith.addf %246, %248 : vector<1x256xf32>
    %250 = vector.extract_strided_slice %159 {offsets = [32, 0], sizes = [1, 256], strides = [1, 1]} : vector<49x256xf32> to vector<1x256xf32>
    %c188_i32_42 = arith.constant 188 : i32
    %251 = tpu.dynamic_rotate %250 by %c188_i32_42 dim 1 : vector<1x256xf32>, i32 -> vector<1x256xf32>
    %252 = arith.addf %249, %251 : vector<1x256xf32>
    %253 = vector.extract_strided_slice %159 {offsets = [33, 0], sizes = [1, 256], strides = [1, 1]} : vector<49x256xf32> to vector<1x256xf32>
    %c187_i32_43 = arith.constant 187 : i32
    %254 = tpu.dynamic_rotate %253 by %c187_i32_43 dim 1 : vector<1x256xf32>, i32 -> vector<1x256xf32>
    %255 = arith.addf %252, %254 : vector<1x256xf32>
    %256 = vector.extract_strided_slice %159 {offsets = [34, 0], sizes = [1, 256], strides = [1, 1]} : vector<49x256xf32> to vector<1x256xf32>
    %c186_i32_44 = arith.constant 186 : i32
    %257 = tpu.dynamic_rotate %256 by %c186_i32_44 dim 1 : vector<1x256xf32>, i32 -> vector<1x256xf32>
    %258 = arith.addf %255, %257 : vector<1x256xf32>
    %259 = vector.extract_strided_slice %159 {offsets = [35, 0], sizes = [1, 256], strides = [1, 1]} : vector<49x256xf32> to vector<1x256xf32>
    %c176_i32_45 = arith.constant 176 : i32
    %260 = tpu.dynamic_rotate %259 by %c176_i32_45 dim 1 : vector<1x256xf32>, i32 -> vector<1x256xf32>
    %261 = vector.extract_strided_slice %159 {offsets = [36, 0], sizes = [1, 256], strides = [1, 1]} : vector<49x256xf32> to vector<1x256xf32>
    %c175_i32_46 = arith.constant 175 : i32
    %262 = tpu.dynamic_rotate %261 by %c175_i32_46 dim 1 : vector<1x256xf32>, i32 -> vector<1x256xf32>
    %263 = arith.addf %260, %262 : vector<1x256xf32>
    %264 = vector.extract_strided_slice %159 {offsets = [37, 0], sizes = [1, 256], strides = [1, 1]} : vector<49x256xf32> to vector<1x256xf32>
    %c174_i32_47 = arith.constant 174 : i32
    %265 = tpu.dynamic_rotate %264 by %c174_i32_47 dim 1 : vector<1x256xf32>, i32 -> vector<1x256xf32>
    %266 = arith.addf %263, %265 : vector<1x256xf32>
    %267 = vector.extract_strided_slice %159 {offsets = [38, 0], sizes = [1, 256], strides = [1, 1]} : vector<49x256xf32> to vector<1x256xf32>
    %c173_i32_48 = arith.constant 173 : i32
    %268 = tpu.dynamic_rotate %267 by %c173_i32_48 dim 1 : vector<1x256xf32>, i32 -> vector<1x256xf32>
    %269 = arith.addf %266, %268 : vector<1x256xf32>
    %270 = vector.extract_strided_slice %159 {offsets = [39, 0], sizes = [1, 256], strides = [1, 1]} : vector<49x256xf32> to vector<1x256xf32>
    %c172_i32_49 = arith.constant 172 : i32
    %271 = tpu.dynamic_rotate %270 by %c172_i32_49 dim 1 : vector<1x256xf32>, i32 -> vector<1x256xf32>
    %272 = arith.addf %269, %271 : vector<1x256xf32>
    %273 = vector.extract_strided_slice %159 {offsets = [40, 0], sizes = [1, 256], strides = [1, 1]} : vector<49x256xf32> to vector<1x256xf32>
    %c171_i32_50 = arith.constant 171 : i32
    %274 = tpu.dynamic_rotate %273 by %c171_i32_50 dim 1 : vector<1x256xf32>, i32 -> vector<1x256xf32>
    %275 = arith.addf %272, %274 : vector<1x256xf32>
    %276 = vector.extract_strided_slice %159 {offsets = [41, 0], sizes = [1, 256], strides = [1, 1]} : vector<49x256xf32> to vector<1x256xf32>
    %c170_i32_51 = arith.constant 170 : i32
    %277 = tpu.dynamic_rotate %276 by %c170_i32_51 dim 1 : vector<1x256xf32>, i32 -> vector<1x256xf32>
    %278 = arith.addf %275, %277 : vector<1x256xf32>
    %279 = vector.extract_strided_slice %159 {offsets = [42, 0], sizes = [1, 256], strides = [1, 1]} : vector<49x256xf32> to vector<1x256xf32>
    %c160_i32_52 = arith.constant 160 : i32
    %280 = tpu.dynamic_rotate %279 by %c160_i32_52 dim 1 : vector<1x256xf32>, i32 -> vector<1x256xf32>
    %281 = vector.extract_strided_slice %159 {offsets = [43, 0], sizes = [1, 256], strides = [1, 1]} : vector<49x256xf32> to vector<1x256xf32>
    %c159_i32_53 = arith.constant 159 : i32
    %282 = tpu.dynamic_rotate %281 by %c159_i32_53 dim 1 : vector<1x256xf32>, i32 -> vector<1x256xf32>
    %283 = arith.addf %280, %282 : vector<1x256xf32>
    %284 = vector.extract_strided_slice %159 {offsets = [44, 0], sizes = [1, 256], strides = [1, 1]} : vector<49x256xf32> to vector<1x256xf32>
    %c158_i32_54 = arith.constant 158 : i32
    %285 = tpu.dynamic_rotate %284 by %c158_i32_54 dim 1 : vector<1x256xf32>, i32 -> vector<1x256xf32>
    %286 = arith.addf %283, %285 : vector<1x256xf32>
    %287 = vector.extract_strided_slice %159 {offsets = [45, 0], sizes = [1, 256], strides = [1, 1]} : vector<49x256xf32> to vector<1x256xf32>
    %c157_i32_55 = arith.constant 157 : i32
    %288 = tpu.dynamic_rotate %287 by %c157_i32_55 dim 1 : vector<1x256xf32>, i32 -> vector<1x256xf32>
    %289 = arith.addf %286, %288 : vector<1x256xf32>
    %290 = vector.extract_strided_slice %159 {offsets = [46, 0], sizes = [1, 256], strides = [1, 1]} : vector<49x256xf32> to vector<1x256xf32>
    %c156_i32_56 = arith.constant 156 : i32
    %291 = tpu.dynamic_rotate %290 by %c156_i32_56 dim 1 : vector<1x256xf32>, i32 -> vector<1x256xf32>
    %292 = arith.addf %289, %291 : vector<1x256xf32>
    %293 = vector.extract_strided_slice %159 {offsets = [47, 0], sizes = [1, 256], strides = [1, 1]} : vector<49x256xf32> to vector<1x256xf32>
    %c155_i32_57 = arith.constant 155 : i32
    %294 = tpu.dynamic_rotate %293 by %c155_i32_57 dim 1 : vector<1x256xf32>, i32 -> vector<1x256xf32>
    %295 = arith.addf %292, %294 : vector<1x256xf32>
    %296 = vector.extract_strided_slice %159 {offsets = [48, 0], sizes = [1, 256], strides = [1, 1]} : vector<49x256xf32> to vector<1x256xf32>
    %c154_i32_58 = arith.constant 154 : i32
    %297 = tpu.dynamic_rotate %296 by %c154_i32_58 dim 1 : vector<1x256xf32>, i32 -> vector<1x256xf32>
    %298 = arith.addf %295, %297 : vector<1x256xf32>
    %299 = arith.addf %178, %198 : vector<1x256xf32>
    %300 = arith.addf %218, %238 : vector<1x256xf32>
    %301 = arith.addf %258, %278 : vector<1x256xf32>
    %302 = arith.addf %299, %300 : vector<1x256xf32>
    %303 = arith.addf %301, %298 : vector<1x256xf32>
    %304 = arith.addf %302, %303 : vector<1x256xf32>
    %305 = vector.broadcast %0 : f32 to vector<1x256xf32>
    %306 = arith.cmpf ogt, %304, %305 : vector<1x256xf32>
    %307 = arith.extui %306 : vector<1x256xi1> to vector<1x256xi32>
    %308 = arith.sitofp %307 : vector<1x256xi32> to vector<1x256xf32>
    %c1_59 = arith.constant 1 : index
    %c0_60 = arith.constant 0 : index
    %c0_61 = arith.constant 0 : index
    %309 = vector.load %arg4[%c1_59, %c0_60, %c0_61] : memref<2x1x256xf32, #tpu.memory_space<vmem>>, vector<1x1x256xf32>
    %310 = vector.shape_cast %309 : vector<1x1x256xf32> to vector<1x256xf32>
    %311 = vector.shape_cast %308 : vector<1x256xf32> to vector<1x1x256xf32>
    tpu.vector_store %arg4[%c1_59, %c0_60, %c0_61], %311 {strides = array<i32>} : memref<2x1x256xf32, #tpu.memory_space<vmem>>, vector<1x1x256xf32>,
    return
  }
  func.func @transform_0(%arg0: i32) -> (i32, i32, i32) {
    %c0_i32 = arith.constant 0 : i32
    %c0_i32_0 = arith.constant 0 : i32
    %c0_i32_1 = arith.constant 0 : i32
    return %arg0, %c0_i32, %c0_i32_0 : i32, i32, i32
  }
  func.func @transform_1(%arg0: i32) -> (i32, i32) {
    %c0_i32 = arith.constant 0 : i32
    %c0_i32_0 = arith.constant 0 : i32
    %c0_i32_1 = arith.constant 0 : i32
    return %c0_i32, %c0_i32_0 : i32, i32
  }
  func.func @transform_2(%arg0: i32) -> i32 {
    %c0_i32 = arith.constant 0 : i32
    %c0_i32_0 = arith.constant 0 : i32
    return %c0_i32 : i32
  }
  func.func @transform_3(%arg0: i32) -> (i32, i32, i32) {
    %c0_i32 = arith.constant 0 : i32
    %c0_i32_0 = arith.constant 0 : i32
    %c0_i32_1 = arith.constant 0 : i32
    return %arg0, %c0_i32, %c0_i32_0 : i32, i32, i32
  }
}

</mosaic_0001>

<bundles_post_ra>
// kernel: tpu_custom_call.1
= control target key start
LH: loop header
LB: loop body
LE: loop exit
PB: predicated region body
PF: predicated region fallthrough
CT: control target
= control target key end

     0   :  { %9 = vsyncpa [#allocation4], 0  ;;  %s3185_s0 = inlined_call_operand.hbm [shape: f32[2,128,256], index: 0, kind: input, shape index: {}]   ;;  %s3186_s1 = inlined_call_operand.hbm [shape: f32[49,128], index: 1, kind: input, shape index: {}]   ;;  %s3187_s2 = inlined_call_operand.<no memory space> [shape: f32[1], index: 2, kind: input, shape index: {}]   ;;  %s3188_s3 = inlined_call_operand.hbm [shape: f32[2,1,256], index: 3, kind: output, shape index: {}]  }
   0x1   :  { %10 = vsyncpa [#allocation7], 0 }
   0x2   :  { %11 = vsyncpa [#allocation5], 0  ;;  %s1781_s12 = smov [#allocation3]   ;;  %s1709_s16 = scalar_lea.hbm %s3185_s0, 8192 }
   0x3   :  { %s17_s13 = sshll.u32 %s1781_s12, 4  ;;  %p1710_p0 = scmp.ne.s32.totalorder %s3185_s0, %s1709_s16  ;;  %s18_s13 = int_to_ptr.vmem [resolvable:$true] %s17_s13 }
   0x4   :  { %p1713_p1 = scmp.lt.u32.totalorder %s1709_s16, %s3185_s0 }
   0x6   :  { %p1715_p2 = pnand %p1713_p1, %p1710_p0 }
   0x8   :  { %1718 = shalt.err (!%p1715_p2)
}
   0x9   :  { %s1719_s21 = scalar_lea.vmem %s18_s13, 8192  ;;  %p1724_p4 = scmp.lt.s32.totalorder %s18_s13, %s18_s13 }
   0xa   :  { %p1720_p3 = scmp.ne.s32.totalorder %s18_s13, %s1719_s21  ;;  %p1725_p5 = scmp.lt.s32.totalorder %s1719_s21, %s1719_s21 }
   0xc   :  { %p1726_p6 = por %p1725_p5, %p1724_p4 }
   0xe   :  { %p1727_p7 = pnand %p1726_p6, %p1720_p3 }
  0x10   :  { %1730 = shalt.err (!%p1727_p7)
}
  0x11   :  { %s1782_s22 = smov 256   ;;  %s1783_s23 = smov 16  }
  0x12   :  { %23 = dma.hbm_to_vmem [thread:$0]  %s3185_s0, 8192, %s18_s13, [#allocation4], %s1782_s22, %s1782_s22, %s1783_s23  }
  0x13   :  { %s1784_s26 = smov [#allocation6]   ;;  %s1731_s30 = scalar_lea.hbm %s3186_s1, 896 }
  0x14   :  { %s29_s27 = sshll.u32 %s1784_s26, 4  ;;  %p1732_p8 = scmp.ne.s32.totalorder %s3186_s1, %s1731_s30  ;;  %s30_s27 = int_to_ptr.vmem [resolvable:$true] %s29_s27 }
  0x15   :  { %p1735_p9 = scmp.lt.u32.totalorder %s1731_s30, %s3186_s1 }
  0x17   :  { %p1737_p10 = pnand %p1735_p9, %p1732_p8 }
  0x19   :  { %1740 = shalt.err (!%p1737_p10)
}
  0x1a   :  { %s1741_s8 = scalar_lea.vmem %s30_s27, 896  ;;  %p1746_p12 = scmp.lt.s32.totalorder %s30_s27, %s30_s27 }
  0x1b   :  { %p1742_p11 = scmp.ne.s32.totalorder %s30_s27, %s1741_s8  ;;  %p1747_p13 = scmp.lt.s32.totalorder %s1741_s8, %s1741_s8 }
  0x1d   :  { %p1748_p0 = por %p1747_p13, %p1746_p12 }
  0x1f   :  { %p1749_p1 = pnand %p1748_p0, %p1742_p11 }
  0x21   :  { %1752 = shalt.err (!%p1749_p1)
}
  0x22   :  { %s1785_s0 = smov 128   ;;  %s1786_s9 = smov 8  }
  0x23   :  { %35 = dma.hbm_to_vmem [thread:$0]  %s3186_s1, 896, %s30_s27, [#allocation7], %s1785_s0, %s1785_s0, %s1786_s9  }
  0x24   :  { %1775 = dma.done.wait [#allocation4], 8192  }
  0x25   :  { %1776 = vsyncadd [#allocation4], 4294959104 }
  0x26   :  { %1777 = dma.done.wait [#allocation7], 896  }
  0x27   :  { %1778 = vsyncadd [#allocation7], 4294966400  ;;  %v3189_v0 = vmov 0.0   ;;  %v53_v1 = vld [vmem:[#allocation3 + $0x8] sm:$0xff]  ;;  %v55_v2 = vld [vmem:[#allocation3 + $0x18] sm:$0xff]  ;;  %s1788_s1 = smov 126  }
  0x28   :  { %148 = vmatprep.mubr.f32.mxu0 %v3189_v0  ;;  %932 = vmatprep.mubr.f32.mxu1 %v3189_v0  ;;  %v52_v3 = vld [vmem:[#allocation3] sm:$0xff]  ;;  %v1587_v4 = vpack.c.bf16 %v55_v2, %v53_v1  ;;  %v54_v5 = vld [vmem:[#allocation3 + $0x10] sm:$0xff]  ;;  %v57_v6 = vld [vmem:[#allocation3 + $0x28] sm:$0xff]  ;;  %s1789_s12 = smov 127   ;;  %s1790_s13 = smov 125  }
  0x29   :  { %v59_v7 = vld [vmem:[#allocation3 + $0x38] sm:$0xff]  ;;  %v1589_v8 = vpack.c.bf16 %v54_v5, %v52_v3  ;;  %v56_v10 = vld [vmem:[#allocation3 + $0x20] sm:$0xff]  ;;  %v58_v11 = vld [vmem:[#allocation3 + $0x30] sm:$0xff]  ;;  %s1791_s14 = smov 124   ;;  %s1792_s15 = smov 123  }
  0x2a   :  { %v1591_v9 = vpack.c.bf16 %v59_v7, %v57_v6  ;;  %v61_v12 = vld [vmem:[#allocation3 + $0x48] sm:$0xff]  ;;  %1588 = vmatprep.subr.bf16.mxu0 %v1587_v4  ;;  %v63_v13 = vld [vmem:[#allocation3 + $0x58] sm:$0xff]  ;;  %v1593_v14 = vpack.c.bf16 %v58_v11, %v56_v10  ;;  %v60_v16 = vld [vmem:[#allocation3 + $0x40] sm:$0xff]  ;;  %s1793_s16 = smov 122   ;;  %s1794_s17 = smov 112  }
  0x2b   :  { %1590 = vmatpush1.bf16.msra.mxu0 %v1589_v8  ;;  %v1595_v15 = vpack.c.bf16 %v63_v13, %v61_v12  ;;  %v62_v17 = vld [vmem:[#allocation3 + $0x50] sm:$0xff]  ;;  %v65_v18 = vld [vmem:[#allocation3 + $0x68] sm:$0xff]  ;;  %v67_v19 = vld [vmem:[#allocation3 + $0x78] sm:$0xff]  ;;  %s1795_s18 = smov 111   ;;  %s1796_s19 = smov 110  }
  0x2c   :  { %1592 = vmatprep.subr.bf16.mxu0 %v1591_v9  ;;  %v1597_v20 = vpack.c.bf16 %v62_v17, %v60_v16  ;;  %v64_v21 = vld [vmem:[#allocation3 + $0x60] sm:$0xff]  ;;  %v837_v22 = vld [vmem:[#allocation3 + $0x108] sm:$0xff]  ;;  %v839_v23 = vld [vmem:[#allocation3 + $0x118] sm:$0xff]  ;;  %v1599_v24 = vpack.c.bf16 %v67_v19, %v65_v18  ;;  %s1797_s20 = smov 109   ;;  %s1798_s21 = smov 108  }
  0x2d   :  { %v66_v25 = vld [vmem:[#allocation3 + $0x70] sm:$0xff]  ;;  %v1619_v26 = vpack.c.bf16 %v839_v23, %v837_v22  ;;  %v836_v27 = vld [vmem:[#allocation3 + $0x100] sm:$0xff]  ;;  %v69_v29 = vld [vmem:[#allocation3 + $0x88] sm:$0xff]  ;;  %s1799_s22 = smov 107   ;;  %s1800_s23 = smov 106  }
  0x2e   :  { %v838_v28 = vld [vmem:[#allocation3 + $0x110] sm:$0xff]  ;;  %v71_v30 = vld [vmem:[#allocation3 + $0x98] sm:$0xff]  ;;  %v841_v32 = vld [vmem:[#allocation3 + $0x128] sm:$0xff]  ;;  %v1601_v35 = vpack.c.bf16 %v66_v25, %v64_v21  ;;  %s1801_s24 = smov 96   ;;  %s1802_s25 = smov 95  }
  0x2f   :  { %1594 = vmatpush1.bf16.msra.mxu0 %v1593_v14  ;;  %v1621_v31 = vpack.c.bf16 %v838_v28, %v836_v27  ;;  %v68_v33 = vld [vmem:[#allocation3 + $0x80] sm:$0xff]  ;;  %1620 = vmatprep.subr.bf16.mxu1 %v1619_v26  ;;  %v843_v34 = vld [vmem:[#allocation3 + $0x138] sm:$0xff]  ;;  %v70_v36 = vld [vmem:[#allocation3 + $0x90] sm:$0xff]  ;;  %v1603_v40 = vpack.c.bf16 %v71_v30, %v69_v29  ;;  %s1803_s26 = smov 94   ;;  %s1804_s27 = smov 93  }
  0x30   :  { %1596 = vmatprep.subr.bf16.mxu0 %v1595_v15  ;;  %v1623_v37 = vpack.c.bf16 %v843_v34, %v841_v32  ;;  %v840_v38 = vld [vmem:[#allocation3 + $0x120] sm:$0xff]  ;;  %v842_v39 = vld [vmem:[#allocation3 + $0x130] sm:$0xff]  ;;  %v73_v41 = vld [vmem:[#allocation3 + $0xa8] sm:$0xff]  ;;  %v1605_v51 = vpack.c.bf16 %v70_v36, %v68_v33  ;;  %s1805_s28 = smov 92   ;;  %s1806_s29 = smov 91  }
  0x31   :  { %1622 = vmatpush1.bf16.msra.mxu1 %v1621_v31  ;;  %v1625_v42 = vpack.c.bf16 %v842_v39, %v840_v38  ;;  %v845_v43 = vld [vmem:[#allocation3 + $0x148] sm:$0xff]  ;;  %v847_v44 = vld [vmem:[#allocation3 + $0x158] sm:$0xff]  ;;  %v844_v47 = vld [vmem:[#allocation3 + $0x140] sm:$0xff]  ;;  %s1807_s30 = smov 90   ;;  %s1808_s4 = smov 80  }
  0x32   :  { %v75_v45 = vld [vmem:[#allocation3 + $0xb8] sm:$0xff]  ;;  %1624 = vmatprep.subr.bf16.mxu1 %v1623_v37  ;;  %v1627_v46 = vpack.c.bf16 %v847_v44, %v845_v43  ;;  %v846_v48 = vld [vmem:[#allocation3 + $0x150] sm:$0xff]  ;;  %v849_v49 = vld [vmem:[#allocation3 + $0x168] sm:$0xff]  ;;  %s1809_s5 = smov 79   ;;  %s1810_s6 = smov 78  }
  0x33   :  { %1598 = vmatpush1.bf16.msra.mxu0 %v1597_v20  ;;  %v851_v50 = vld [vmem:[#allocation3 + $0x178] sm:$0xff]  ;;  %v72_v52 = vld [vmem:[#allocation3 + $0xa0] sm:$0xff]  ;;  %v74_v53 = vld [vmem:[#allocation3 + $0xb0] sm:$0xff]  ;;  %v1629_v54 = vpack.c.bf16 %v846_v48, %v844_v47  ;;  %v1607_v55 = vpack.c.bf16 %v75_v45, %v73_v41  ;;  %s1811_s7 = smov 77   ;;  %s1812_s8 = smov 76  }
  0x34   :  { %1600 = vmatprep.subr.bf16.mxu0 %v1599_v24  ;;  %v77_v56 = vld [vmem:[#allocation3 + $0xc8] sm:$0xff]  ;;  %v1631_v57 = vpack.c.bf16 %v851_v50, %v849_v49  ;;  %v848_v58 = vld [vmem:[#allocation3 + $0x160] sm:$0xff]  ;;  %v850_v59 = vld [vmem:[#allocation3 + $0x170] sm:$0xff]  ;;  %v1609_v63 = vpack.c.bf16 %v74_v53, %v72_v52  ;;  %s1813_s0 = smov 75   ;;  %s1814_s9 = smov 74  }
  0x35   :  { %1626 = vmatpush1.bf16.msra.mxu1 %v1625_v42  ;;  %v79_v60 = vld [vmem:[#allocation3 + $0xd8] sm:$0xff]  ;;  %v853_v61 = vld [vmem:[#allocation3 + $0x188] sm:$0xff]  ;;  %v76_v1 = vld [vmem:[#allocation3 + $0xc0] sm:$0xff]  ;;  %v1633_v3 = vpack.c.bf16 %v850_v59, %v848_v58  ;;  %s1815_s10 = smov 64   ;;  %s1816_s11 = smov 63  }
  0x36   :  { %1628 = vmatprep.subr.bf16.mxu1 %v1627_v46  ;;  %v855_v62 = vld [vmem:[#allocation3 + $0x198] sm:$0xff]  ;;  %v78_v2 = vld [vmem:[#allocation3 + $0xd0] sm:$0xff]  ;;  %v1611_v4 = vpack.c.bf16 %v79_v60, %v77_v56  ;;  %v81_v5 = vld [vmem:[#allocation3 + $0xe8] sm:$0xff] }
  0x37   :  { %1602 = vmatpush1.bf16.msra.mxu0 %v1601_v35  ;;  %v1635_v6 = vpack.c.bf16 %v855_v62, %v853_v61  ;;  %v852_v7 = vld [vmem:[#allocation3 + $0x180] sm:$0xff]  ;;  %v854_v8 = vld [vmem:[#allocation3 + $0x190] sm:$0xff]  ;;  %v83_v9 = vld [vmem:[#allocation3 + $0xf8] sm:$0xff]  ;;  %v1613_v12 = vpack.c.bf16 %v78_v2, %v76_v1 }
  0x38   :  { %1604 = vmatprep.subr.bf16.mxu0 %v1603_v40  ;;  %v857_v10 = vld [vmem:[#allocation3 + $0x1a8] sm:$0xff]  ;;  %v859_v11 = vld [vmem:[#allocation3 + $0x1b8] sm:$0xff]  ;;  %v80_v13 = vld [vmem:[#allocation3 + $0xe0] sm:$0xff]  ;;  %v1637_v14 = vpack.c.bf16 %v854_v8, %v852_v7  ;;  %v1615_v15 = vpack.c.bf16 %v83_v9, %v81_v5 }
  0x39   :  { %1630 = vmatpush1.bf16.msra.mxu1 %v1629_v54  ;;  %v82_v16 = vld [vmem:[#allocation3 + $0xf0] sm:$0xff]  ;;  %v1639_v17 = vpack.c.bf16 %v859_v11, %v857_v10  ;;  %v856_v18 = vld [vmem:[#allocation3 + $0x1a0] sm:$0xff]  ;;  %v861_v20 = vld [vmem:[#allocation3 + $0x1c8] sm:$0xff] }
  0x3a   :  { %1632 = vmatprep.subr.bf16.mxu1 %v1631_v57  ;;  %v858_v19 = vld [vmem:[#allocation3 + $0x1b0] sm:$0xff]  ;;  %v863_v21 = vld [vmem:[#allocation3 + $0x1d8] sm:$0xff]  ;;  %v1617_v22 = vpack.c.bf16 %v82_v16, %v80_v13  ;;  %v860_v25 = vld [vmem:[#allocation3 + $0x1c0] sm:$0xff] }
  0x3b   :  { %1606 = vmatpush1.bf16.msra.mxu0 %v1605_v51  ;;  %v1641_v23 = vpack.c.bf16 %v858_v19, %v856_v18  ;;  %v1643_v24 = vpack.c.bf16 %v863_v21, %v861_v20  ;;  %v862_v26 = vld [vmem:[#allocation3 + $0x1d0] sm:$0xff]  ;;  %v865_v27 = vld [vmem:[#allocation3 + $0x1e8] sm:$0xff]  ;;  %v867_v28 = vld [vmem:[#allocation3 + $0x1f8] sm:$0xff] }
  0x3c   :  { %1608 = vmatprep.subr.bf16.mxu0 %v1607_v55  ;;  %v45_v29 = vld [vmem:[#allocation6] sm:$0xff]  ;;  %v1645_v30 = vpack.c.bf16 %v862_v26, %v860_v25  ;;  %v1647_v31 = vpack.c.bf16 %v867_v28, %v865_v27  ;;  %v866_v33 = vld [vmem:[#allocation3 + $0x1f0] sm:$0xff]  ;;  %v46_v35 = vld [vmem:[#allocation6 + $0x8] sm:$0xff] }
  0x3d   :  { %1634 = vmatpush1.bf16.msra.mxu1 %v1633_v3  ;;  %v864_v32 = vld [vmem:[#allocation3 + $0x1e0] sm:$0xff]  ;;  %v47_v36 = vld [vmem:[#allocation6 + $0x10] sm:$0xff]  ;;  %v48_v37 = vld [vmem:[#allocation6 + $0x18] sm:$0xff] }
  0x3e   :  { %1636 = vmatprep.subr.bf16.mxu1 %v1635_v6  ;;  %v1649_v34 = vpack.c.bf16 %v866_v33, %v864_v32  ;;  %v49_v38 = vld [vmem:[#allocation6 + $0x20] sm:$0xff]  ;;  %v50_v39 = vld [vmem:[#allocation6 + $0x28] sm:$0xff]  ;;  %v51_v40 = vld [vmem:[#allocation6 + $0x30] sm:$0x1] }
  0x3f   :  { %1610 = vmatpush1.bf16.msra.mxu0 %v1609_v63 }
  0x40   :  { %1612 = vmatprep.subr.bf16.mxu0 %v1611_v4 }
  0x41   :  { %1638 = vmatpush1.bf16.msra.mxu1 %v1637_v14 }
  0x42   :  { %1640 = vmatprep.subr.bf16.mxu1 %v1639_v17 }
  0x43   :  { %1614 = vmatpush1.bf16.msra.mxu0 %v1613_v12 }
  0x44   :  { %1616 = vmatprep.subr.bf16.mxu0 %v1615_v15 }
  0x45   :  { %1642 = vmatpush1.bf16.msra.mxu1 %v1641_v23 }
  0x46   :  { %1644 = vmatprep.subr.bf16.mxu1 %v1643_v24 }
  0x47   :  { %1618 = vmatpush1.bf16.msra.mxu0 %v1617_v22 }
  0x49   :  { %1646 = vmatpush1.bf16.msra.mxu1 %v1645_v30 }
  0x4a   :  { %149 = vmatmul.mubr.f32.vlgmr.msra.gmra.mrb[0].mxu0 %v45_v29  ;;  %1648 = vmatprep.subr.bf16.mxu1 %v1647_v31 }
  0x4b   :  { %154 = vmatprep.mubr.f32.mxu0 %v3189_v0 }
  0x4d   :  { %1650 = vmatpush1.bf16.msra.mxu1 %v1649_v34 }
  0x4e   :  { %155 = vmatmul.mubr.f32.gmra.mrb[2].mxu0 %v46_v35 }
  0x4f   :  { %160 = vmatprep.mubr.f32.mxu0 %v3189_v0 }
  0x50   :  { %933 = vmatmul.mubr.f32.vlgmr.msra.gmra.mrb[0].mxu1 %v45_v29 }
  0x51   :  { %938 = vmatprep.mubr.f32.mxu1 %v3189_v0 }
  0x52   :  { %161 = vmatmul.mubr.f32.gmra.mrb[4].mxu0 %v47_v36 }
  0x53   :  { %166 = vmatprep.mubr.f32.mxu0 %v3189_v0 }
  0x54   :  { %939 = vmatmul.mubr.f32.gmra.mrb[2].mxu1 %v46_v35 }
  0x55   :  { %944 = vmatprep.mubr.f32.mxu1 %v3189_v0 }
  0x56   :  { %167 = vmatmul.mubr.f32.gmra.mrb[6].mxu0 %v48_v37 }
  0x57   :  { %172 = vmatprep.mubr.f32.mxu0 %v3189_v0 }
  0x58   :  { %945 = vmatmul.mubr.f32.gmra.mrb[4].mxu1 %v47_v36 }
  0x59   :  { %950 = vmatprep.mubr.f32.mxu1 %v3189_v0 }
  0x5a   :  { %173 = vmatmul.mubr.f32.gmra.mrb[8].mxu0 %v49_v38 }
  0x5b   :  { %178 = vmatprep.mubr.f32.mxu0 %v3189_v0 }
  0x5c   :  { %951 = vmatmul.mubr.f32.gmra.mrb[6].mxu1 %v48_v37 }
  0x5d   :  { %956 = vmatprep.mubr.f32.mxu1 %v3189_v0 }
  0x5e   :  { %179 = vmatmul.mubr.f32.gmra.mrb[10].mxu0 %v50_v39 }
  0x5f   :  { %184 = vmatprep.mubr.f32.mxu0 %v3189_v0 }
  0x60   :  { %957 = vmatmul.mubr.f32.gmra.mrb[8].mxu1 %v49_v38 }
  0x61   :  { %962 = vmatprep.mubr.f32.mxu1 %v3189_v0 }
  0x62   :  { %185 = vmatmul.mubr.f32.gmra.mrb[12].mxu0 %v51_v40 }
  0x64   :  { %963 = vmatmul.mubr.f32.gmra.mrb[10].mxu1 %v50_v39 }
  0x65   :  { %968 = vmatprep.mubr.f32.mxu1 %v3189_v0 }
  0x68   :  { %969 = vmatmul.mubr.f32.gmra.mrb[12].mxu1 %v51_v40 }
 0x11d   :  { %v1897_v41 = vpop.f32.mrb[0].mxu0 }
 0x11e   :  { %v1899_v42 = vpop.f32.mrb[1].mxu0  ;;  %v208_v43 = vrot.slane %v1897_v41, 2  ;;  %v193_v44 = vrot.slane %v1897_v41, 1  ;;  %v221_v46 = vrot.slane %v1897_v41, 3  ;;  %v234_v51 = vrot.slane %v1897_v41, 4 }
 0x11f   :  { %v209_v47 = vrot.slane %v1899_v42, 2  ;;  %v222_v52 = vrot.slane %v1899_v42, 3  ;;  %v247_v56 = vrot.slane %v1897_v41, 5  ;;  %v235_v57 = vrot.slane %v1899_v42, 4 }
 0x120   :  { %212 = vrot.lane.b32.xlu1 %v208_v43, %s1788_s1  ;;  %197 = vrot.lane.b32.xlu0 %v193_v44, %s1789_s12  ;;  %v260_v60 = vrot.slane %v1897_v41, 6  ;;  %v248_v61 = vrot.slane %v1899_v42, 5  ;;  %v273_v63 = vrot.slane %v1897_v41, 7  ;;  %v261_v1 = vrot.slane %v1899_v42, 6 }
 0x121   :  { %v1905_v45 = vpop.f32.mrb[2].mxu0  ;;  %v274_v3 = vrot.slane %v1899_v42, 7  ;;  %v194_v18 = vrot.slane %v1899_v42, 1 }
 0x122   :  { %v1909_v48 = vpop.f32.mrb[3].mxu0  ;;  %v295_v20 = vrot.slane %v1905_v45, 1  ;;  %v308_v22 = vrot.slane %v1905_v45, 2  ;;  %v321_v24 = vrot.slane %v1905_v45, 3  ;;  %v334_v26 = vrot.slane %v1905_v45, 4 }
 0x123   :  { %v1913_v49 = vpop.f32.mrb[0].mxu1  ;;  %v296_v21 = vrot.slane %v1909_v48, 1  ;;  %v309_v23 = vrot.slane %v1909_v48, 2  ;;  %v322_v25 = vrot.slane %v1909_v48, 3  ;;  %v335_v27 = vrot.slane %v1909_v48, 4 }
 0x124   :  { %225 = vrot.lane.b32.xlu0 %v221_v46, %s1790_s13  ;;  %214 = vrot.lane.b32.xlu1 %v209_v47, %s1788_s1  ;;  %v1919_v53 = vpop.f32.mrb[1].mxu1  ;;  %v977_v2 = vrot.slane %v1913_v49, 1  ;;  %v989_v4 = vrot.slane %v1913_v49, 2  ;;  %v1001_v6 = vrot.slane %v1913_v49, 3  ;;  %v1013_v8 = vrot.slane %v1913_v49, 4 }
 0x125   :  { %v1915_v50 = vpop.f32.mrb[4].mxu0  ;;  %v978_v5 = vrot.slane %v1919_v53, 1  ;;  %v990_v7 = vrot.slane %v1919_v53, 2  ;;  %v1002_v9 = vrot.slane %v1919_v53, 3  ;;  %v1025_v10 = vrot.slane %v1913_v49, 5 }
 0x126   :  { %v1921_v54 = vpop.f32.mrb[5].mxu0  ;;  %v1014_v11 = vrot.slane %v1919_v53, 4  ;;  %v1037_v12 = vrot.slane %v1913_v49, 6  ;;  %v1026_v13 = vrot.slane %v1919_v53, 5  ;;  %v1049_v14 = vrot.slane %v1913_v49, 7 }
 0x127   :  { %v1925_v55 = vpop.f32.mrb[2].mxu1  ;;  %v1038_v15 = vrot.slane %v1919_v53, 6  ;;  %v1050_v17 = vrot.slane %v1919_v53, 7  ;;  %v347_v28 = vrot.slane %v1905_v45, 5  ;;  %v348_v29 = vrot.slane %v1909_v48, 5 }
 0x128   :  { %238 = vrot.lane.b32.xlu0 %v234_v51, %s1791_s14  ;;  %227 = vrot.lane.b32.xlu1 %v222_v52, %s1790_s13  ;;  %v1929_v58 = vpop.f32.mrb[3].mxu1  ;;  %v360_v31 = vrot.slane %v1905_v45, 6  ;;  %v361_v32 = vrot.slane %v1909_v48, 6  ;;  %v371_v34 = vrot.slane %v1905_v45, 7  ;;  %v372_v35 = vrot.slane %v1909_v48, 7 }
 0x129   :  { %v1973_v16 = vpop.f32.mrb[6].mxu0  ;;  %v1069_v36 = vrot.slane %v1925_v55, 1  ;;  %v1070_v37 = vrot.slane %v1929_v58, 1  ;;  %v1081_v38 = vrot.slane %v1925_v55, 2  ;;  %v1082_v39 = vrot.slane %v1929_v58, 2 }
 0x12a   :  { %v1979_v19 = vpop.f32.mrb[7].mxu0  ;;  %v1093_v40 = vrot.slane %v1925_v55, 3  ;;  %v1094_v43 = vrot.slane %v1929_v58, 3  ;;  %v1105_v44 = vrot.slane %v1925_v55, 4  ;;  %v1117_v46 = vrot.slane %v1925_v55, 5 }
 0x12b   :  { %v1933_v59 = vpop.f32.mrb[4].mxu1  ;;  %v1118_v47 = vrot.slane %v1929_v58, 5  ;;  %v1130_v51 = vrot.slane %v1929_v58, 6 }
 0x12c   :  { %251 = vrot.lane.b32.xlu0 %v247_v56, %s1792_s15  ;;  %240 = vrot.lane.b32.xlu1 %v235_v57, %s1791_s14  ;;  %v1937_v62 = vpop.f32.mrb[5].mxu1 }
 0x12d   :  { %v2005_v30 = vpop.f32.mrb[8].mxu0 }
 0x12e   :  { %v2011_v33 = vpop.f32.mrb[9].mxu0 }
 0x130   :  { %264 = vrot.lane.b32.xlu0 %v260_v60, %s1793_s16  ;;  %253 = vrot.lane.b32.xlu1 %v248_v61, %s1792_s15  ;;  %v1139_v60 = vrot.slane %v1925_v55, 7  ;;  %v1140_v61 = vrot.slane %v1929_v58, 7 }
 0x131   :  { %v2041_v52 = vpop.f32.mrb[10].mxu0 }
 0x134   :  { %277 = vrot.lane.b32.xlu0 %v273_v63, %s1794_s17  ;;  %266 = vrot.lane.b32.xlu1 %v261_v1, %s1793_s16  ;;  %v2051_v63 = vpop.f32.mrb[11].mxu0 }
 0x138   :  { %981 = vrot.lane.b32.xlu0 %v977_v2, %s1789_s12  ;;  %279 = vrot.lane.b32.xlu1 %v274_v3, %s1794_s17 }
 0x13c   :  { %993 = vrot.lane.b32.xlu0 %v989_v4, %s1788_s1  ;;  %983 = vrot.lane.b32.xlu1 %v978_v5, %s1789_s12  ;;  %v395_v5 = vrot.slane %v1915_v50, 1 }
 0x140   :  { %1005 = vrot.lane.b32.xlu0 %v1001_v6, %s1790_s13  ;;  %995 = vrot.lane.b32.xlu1 %v990_v7, %s1788_s1  ;;  %v396_v6 = vrot.slane %v1921_v54, 1  ;;  %s1817_s1 = smov 62  }
 0x144   :  { %1017 = vrot.lane.b32.xlu0 %v1013_v8, %s1791_s14  ;;  %1007 = vrot.lane.b32.xlu1 %v1002_v9, %s1790_s13  ;;  %v408_v9 = vrot.slane %v1915_v50, 2  ;;  %s1819_s13 = smov 60  }
 0x148   :  { %1029 = vrot.lane.b32.xlu0 %v1025_v10, %s1792_s15  ;;  %1019 = vrot.lane.b32.xlu1 %v1014_v11, %s1791_s14  ;;  %v409_v10 = vrot.slane %v1921_v54, 2  ;;  %v3191_v11 = vlaneseq  ;;  %s1820_s14 = smov 59  }
 0x14c   :  { %1041 = vrot.lane.b32.xlu0 %v1037_v12, %s1793_s16  ;;  %1031 = vrot.lane.b32.xlu1 %v1026_v13, %s1792_s15  ;;  %s1821_s15 = smov 58  }
 0x150   :  { %1053 = vrot.lane.b32.xlu0 %v1049_v14, %s1794_s17  ;;  %1043 = vrot.lane.b32.xlu1 %v1038_v15, %s1793_s16  ;;  %v421_v14 = vrot.slane %v1915_v50, 3  ;;  %v422_v15 = vrot.slane %v1921_v54, 3  ;;  %s1822_s16 = smov 48  }
 0x154   :  { %1055 = vrot.lane.b32.xlu1 %v1050_v17, %s1794_s17  ;;  %199 = vrot.lane.b32.xlu0 %v194_v18, %s1789_s12  ;;  %v2090_v17 = vand.u32 127, %v3191_v11  ;;  %s1818_s12 = smov 61   ;;  %s1823_s17 = smov 47  }
 0x156   :  { %vm203_vm0 = vcmp.lt.s32.totalorder %v2090_v17, 127  ;;  %vm216_vm1 = vcmp.lt.s32.totalorder %v2090_v17, 126  ;;  %vm229_vm2 = vcmp.lt.s32.totalorder %v2090_v17, 125  ;;  %vm242_vm3 = vcmp.lt.s32.totalorder %v2090_v17, 124 }
 0x157   :  { %vm255_vm4 = vcmp.lt.s32.totalorder %v2090_v17, 123  ;;  %vm268_vm5 = vcmp.lt.s32.totalorder %v2090_v17, 122  ;;  %vm281_vm6 = vcmp.lt.s32.totalorder %v2090_v17, 112  ;;  %vm288_vm7 = vcmp.lt.s32.totalorder %v2090_v17, 111 }
 0x158   :  { %284 = vrot.lane.b32.xlu0 %v1905_v45, %s1795_s18  ;;  %286 = vrot.lane.b32.xlu1 %v1909_v48, %s1795_s18  ;;  %v1106_v45 = vrot.slane %v1929_v58, 4  ;;  %v1129_v48 = vrot.slane %v1925_v55, 6  ;;  %vm303_vm8 = vcmp.lt.s32.totalorder %v2090_v17, 110  ;;  %vm316_vm9 = vcmp.lt.s32.totalorder %v2090_v17, 109 }
 0x159   :  { %vm329_vm10 = vcmp.lt.s32.totalorder %v2090_v17, 108  ;;  %vm342_vm11 = vcmp.lt.s32.totalorder %v2090_v17, 107  ;;  %vm355_vm12 = vcmp.lt.s32.totalorder %v2090_v17, 106  ;;  %vm368_vm13 = vcmp.lt.s32.totalorder %v2090_v17, 96 }
 0x15a   :  { %vm379_vm14 = vcmp.lt.s32.totalorder %v2090_v17, 95  ;;  %vm3196_vm15 = vcmp.lt.s32.totalorder %v2090_v17, 94 }
 0x15c   :  { %1059 = vrot.lane.b32.xlu0 %v1925_v55, %s1795_s18  ;;  %1061 = vrot.lane.b32.xlu1 %v1929_v58, %s1795_s18  ;;  %s1824_s18 = smov 46  }
 0x160   :  { %299 = vrot.lane.b32.xlu0 %v295_v20, %s1796_s19  ;;  %301 = vrot.lane.b32.xlu1 %v296_v21, %s1796_s19  ;;  %v434_v21 = vrot.slane %v1915_v50, 4 }
 0x164   :  { %312 = vrot.lane.b32.xlu0 %v308_v22, %s1797_s20  ;;  %314 = vrot.lane.b32.xlu1 %v309_v23, %s1797_s20  ;;  %v435_v22 = vrot.slane %v1921_v54, 4 }
 0x168   :  { %325 = vrot.lane.b32.xlu0 %v321_v24, %s1798_s21  ;;  %327 = vrot.lane.b32.xlu1 %v322_v25, %s1798_s21  ;;  %v447_v25 = vrot.slane %v1915_v50, 5 }
 0x16c   :  { %338 = vrot.lane.b32.xlu0 %v334_v26, %s1799_s22  ;;  %340 = vrot.lane.b32.xlu1 %v335_v27, %s1799_s22  ;;  %v448_v26 = vrot.slane %v1921_v54, 5 }
 0x170   :  { %351 = vrot.lane.b32.xlu0 %v347_v28, %s1800_s23  ;;  %353 = vrot.lane.b32.xlu1 %v348_v29, %s1800_s23 }
 0x174   :  { %364 = vrot.lane.b32.xlu0 %v360_v31, %s1801_s24  ;;  %366 = vrot.lane.b32.xlu1 %v361_v32, %s1801_s24  ;;  %v2109_v32 = vpop.f32.mrb[12].mxu0 }
 0x178   :  { %375 = vrot.lane.b32.xlu0 %v371_v34, %s1802_s25  ;;  %377 = vrot.lane.b32.xlu1 %v372_v35, %s1802_s25 }
 0x17c   :  { %1073 = vrot.lane.b32.xlu0 %v1069_v36, %s1796_s19  ;;  %1075 = vrot.lane.b32.xlu1 %v1070_v37, %s1796_s19  ;;  %v458_v36 = vrot.slane %v1915_v50, 6  ;;  %v459_v37 = vrot.slane %v1921_v54, 6  ;;  %s1825_s19 = smov 45  }
 0x180   :  { %1085 = vrot.lane.b32.xlu0 %v1081_v38, %s1797_s20  ;;  %1087 = vrot.lane.b32.xlu1 %v1082_v39, %s1797_s20  ;;  %s1826_s20 = smov 44  }
 0x184   :  { %1097 = vrot.lane.b32.xlu0 %v1093_v40, %s1798_s21  ;;  %1099 = vrot.lane.b32.xlu1 %v1094_v43, %s1798_s21  ;;  %v2120_v40 = vpop.f32.mrb[13].mxu0  ;;  %s1827_s21 = smov 43  }
 0x188   :  { %1109 = vrot.lane.b32.xlu0 %v1105_v44, %s1799_s22  ;;  %1111 = vrot.lane.b32.xlu1 %v1106_v45, %s1799_s22  ;;  %v471_v45 = vrot.slane %v1915_v50, 7  ;;  %s1828_s22 = smov 42  }
 0x18c   :  { %1121 = vrot.lane.b32.xlu0 %v1117_v46, %s1800_s23  ;;  %1123 = vrot.lane.b32.xlu1 %v1118_v47, %s1800_s23  ;;  %v472_v46 = vrot.slane %v1921_v54, 7  ;;  %s1829_s23 = smov 32  }
 0x190   :  { %1133 = vrot.lane.b32.xlu0 %v1129_v48, %s1801_s24  ;;  %1135 = vrot.lane.b32.xlu1 %v1130_v51, %s1801_s24  ;;  %s1830_s24 = smov 31  }
 0x192   :  { %v2043_v56 = vpop.permute.xlu1 %212  ;;  %v2045_v57 = vpop.permute.xlu0 %197 }
 0x194   :  { %1143 = vrot.lane.b32.xlu0 %v1139_v60, %s1802_s25  ;;  %1145 = vrot.lane.b32.xlu1 %v1140_v61, %s1802_s25  ;;  %v2131_v61 = vpop.f32.mrb[6].mxu1  ;;  %s1831_s25 = smov 30  }
 0x196   :  { %v2053_v1 = vpop.permute.xlu0 %225  ;;  %v2055_v2 = vpop.permute.xlu1 %214 }
 0x198   :  { %384 = vrot.lane.b32.xlu0 %v1915_v50, %s1803_s26  ;;  %386 = vrot.lane.b32.xlu1 %v1921_v54, %s1803_s26  ;;  %v1161_v54 = vrot.slane %v1933_v59, 1 }
 0x19a   :  { %v2059_v3 = vpop.permute.xlu0 %238  ;;  %v2061_v55 = vpop.permute.xlu1 %227 }
 0x19c   :  { %1151 = vrot.lane.b32.xlu0 %v1933_v59, %s1803_s26  ;;  %1153 = vrot.lane.b32.xlu1 %v1937_v62, %s1803_s26  ;;  %s1832_s26 = smov 29  }
 0x19e   :  { %v2065_v58 = vpop.permute.xlu0 %251  ;;  %v2067_v4 = vpop.permute.xlu1 %240 }
 0x1a0   :  { %399 = vrot.lane.b32.xlu0 %v395_v5, %s1804_s27  ;;  %401 = vrot.lane.b32.xlu1 %v396_v6, %s1804_s27  ;;  %v1162_v6 = vrot.slane %v1937_v62, 1 }
 0x1a2   :  { %v2073_v7 = vpop.permute.xlu0 %264  ;;  %v2075_v8 = vpop.permute.xlu1 %253 }
 0x1a4   :  { %412 = vrot.lane.b32.xlu0 %v408_v9, %s1805_s28  ;;  %414 = vrot.lane.b32.xlu1 %v409_v10, %s1805_s28 }
 0x1a6   :  { %v2081_v12 = vpop.permute.xlu0 %277  ;;  %v2083_v13 = vpop.permute.xlu1 %266 }
 0x1a8   :  { %425 = vrot.lane.b32.xlu0 %v421_v14, %s1806_s29  ;;  %427 = vrot.lane.b32.xlu1 %v422_v15, %s1806_s29  ;;  %v2140_v14 = vpop.f32.mrb[7].mxu1 }
 0x1aa   :  { %v982_v18 = vpop.permute.xlu0 %981  ;;  %v2092_v20 = vpop.permute.xlu1 %279 }
 0x1ac   :  { %438 = vrot.lane.b32.xlu0 %v434_v21, %s1807_s30  ;;  %440 = vrot.lane.b32.xlu1 %v435_v22, %s1807_s30 }
 0x1ae   :  { %v994_v23 = vpop.permute.xlu0 %993  ;;  %v984_v24 = vpop.permute.xlu1 %983 }
 0x1af   :  { %v985_v27 = vsel %vm203_vm0, %v982_v18, %v984_v24  ;;  %v986_v28 = vsel %vm203_vm0, %v984_v24, %v982_v18  ;;  %v1174_v24 = vrot.slane %v1937_v62, 2 }
 0x1b0   :  { %v987_v29 = vadd.f32 %v985_v27, %v1913_v49  ;;  %v988_v31 = vadd.f32 %v986_v28, %v1919_v53  ;;  %451 = vrot.lane.b32.xlu0 %v447_v25, %s1808_s4  ;;  %453 = vrot.lane.b32.xlu1 %v448_v26, %s1808_s4 }
 0x1b2   :  { %v1006_v34 = vpop.permute.xlu0 %1005  ;;  %v996_v35 = vpop.permute.xlu1 %995 }
 0x1b3   :  { %v997_v49 = vsel %vm216_vm1, %v994_v23, %v996_v35  ;;  %v998_v53 = vsel %vm216_vm1, %v996_v35, %v994_v23  ;;  %v1173_v23 = vrot.slane %v1933_v59, 2  ;;  %v1186_v35 = vrot.slane %v1937_v62, 3 }
 0x1b4   :  { %v999_v38 = vadd.f32 %v997_v49, %v987_v29  ;;  %v1000_v39 = vadd.f32 %v998_v53, %v988_v31  ;;  %462 = vrot.lane.b32.xlu0 %v458_v36, %s1809_s5  ;;  %464 = vrot.lane.b32.xlu1 %v459_v37, %s1809_s5 }
 0x1b6   :  { %v1018_v43 = vpop.permute.xlu0 %1017  ;;  %v1008_v44 = vpop.permute.xlu1 %1007 }
 0x1b7   :  { %v1009_v47 = vsel %vm229_vm2, %v1006_v34, %v1008_v44  ;;  %v1010_v48 = vsel %vm229_vm2, %v1008_v44, %v1006_v34  ;;  %v1185_v34 = vrot.slane %v1933_v59, 3  ;;  %v1198_v44 = vrot.slane %v1937_v62, 4 }
 0x1b8   :  { %v1011_v51 = vadd.f32 %v1009_v47, %v999_v38  ;;  %v1012_v60 = vadd.f32 %v1010_v48, %v1000_v39  ;;  %475 = vrot.lane.b32.xlu0 %v471_v45, %s1810_s6  ;;  %477 = vrot.lane.b32.xlu1 %v472_v46, %s1810_s6  ;;  %v1209_v47 = vrot.slane %v1933_v59, 5  ;;  %v1210_v48 = vrot.slane %v1937_v62, 5 }
 0x1ba   :  { %v1030_v50 = vpop.permute.xlu0 %1029  ;;  %v1020_v5 = vpop.permute.xlu1 %1019 }
 0x1bb   :  { %v1021_v9 = vsel %vm242_vm3, %v1018_v43, %v1020_v5  ;;  %v1022_v10 = vsel %vm242_vm3, %v1020_v5, %v1018_v43  ;;  %v1197_v43 = vrot.slane %v1933_v59, 4  ;;  %v1219_v5 = vrot.slane %v1933_v59, 6 }
 0x1bc   :  { %v1023_v15 = vadd.f32 %v1021_v9, %v1011_v51  ;;  %v1024_v18 = vadd.f32 %v1022_v10, %v1012_v60  ;;  %1165 = vrot.lane.b32.xlu0 %v1161_v54, %s1804_s27  ;;  %1167 = vrot.lane.b32.xlu1 %v1162_v6, %s1804_s27  ;;  %v2180_v51 = vpop.f32.mrb[8].mxu1  ;;  %v1220_v54 = vrot.slane %v1937_v62, 6  ;;  %s1833_s27 = smov 28  }
 0x1be   :  { %v1042_v21 = vpop.permute.xlu0 %1041  ;;  %v1032_v22 = vpop.permute.xlu1 %1031 }
 0x1bf   :  { %v1033_v25 = vsel %vm255_vm4, %v1030_v50, %v1032_v22  ;;  %v1034_v26 = vsel %vm255_vm4, %v1032_v22, %v1030_v50 }
 0x1c0   :  { %v1035_v27 = vadd.f32 %v1033_v25, %v1023_v15  ;;  %v1036_v28 = vadd.f32 %v1034_v26, %v1024_v18  ;;  %1177 = vrot.lane.b32.xlu0 %v1173_v23, %s1805_s28  ;;  %1179 = vrot.lane.b32.xlu1 %v1174_v24, %s1805_s28  ;;  %v2194_v18 = vpop.f32.mrb[9].mxu1  ;;  %s1834_s28 = smov 27  }
 0x1c2   :  { %v1054_v29 = vpop.permute.xlu0 %1053  ;;  %v1044_v31 = vpop.permute.xlu1 %1043 }
 0x1c3   :  { %v1045_v36 = vsel %vm268_vm5, %v1042_v21, %v1044_v31  ;;  %v1046_v37 = vsel %vm268_vm5, %v1044_v31, %v1042_v21 }
 0x1c4   :  { %v2160_v49 = vadd.f32 %v1045_v36, %v1035_v27  ;;  %v2162_v53 = vadd.f32 %v1046_v37, %v1036_v28  ;;  %1189 = vrot.lane.b32.xlu0 %v1185_v34, %s1806_s29  ;;  %1191 = vrot.lane.b32.xlu1 %v1186_v35, %s1806_s29  ;;  %v495_v27 = vrot.slane %v1973_v16, 1  ;;  %v496_v28 = vrot.slane %v1979_v19, 1  ;;  %v2222_v36 = vpop.f32.mrb[10].mxu1  ;;  %s1835_s29 = smov 26  }
 0x1c5   :  { %v508_v34 = vrot.slane %v1973_v16, 2  ;;  %v509_v35 = vrot.slane %v1979_v19, 2  ;;  %3217 = vst [vmem:[#allocation12_spill] sm:$0xff] %v2222_v36 }
 0x1c6   :  { %v1056_v38 = vpop.permute.xlu1 %1055  ;;  %v2166_v39 = vpop.permute.xlu0 %199 }
 0x1c7   :  { %v1057_v6 = vsel %vm281_vm6, %v1054_v29, %v1056_v38  ;;  %v1058_v9 = vsel %vm281_vm6, %v1056_v38, %v1054_v29 }
 0x1c8   :  { %1201 = vrot.lane.b32.xlu0 %v1197_v43, %s1807_s30  ;;  %1203 = vrot.lane.b32.xlu1 %v1198_v44, %s1807_s30  ;;  %v521_v43 = vrot.slane %v1973_v16, 3  ;;  %v522_v44 = vrot.slane %v1979_v19, 3 }
 0x1ca   :  { %v2172_v45 = vpop.permute.xlu0 %284  ;;  %v2174_v46 = vpop.permute.xlu1 %286 }
 0x1cc   :  { %1213 = vrot.lane.b32.xlu0 %v1209_v47, %s1808_s4  ;;  %1215 = vrot.lane.b32.xlu1 %v1210_v48, %s1808_s4  ;;  %v2230_v47 = vpop.f32.mrb[11].mxu1 }
 0x1cd   :  { %3218 = vst [vmem:[#allocation13_spill] sm:$0xff] %v2230_v47 }
 0x1ce   :  { %v1060_v60 = vpop.permute.xlu0 %1059  ;;  %v1062_v50 = vpop.permute.xlu1 %1061 }
 0x1cf   :  { %v1063_v10 = vsel %vm288_vm7, %v1060_v60, %v1062_v50  ;;  %v1064_v15 = vsel %vm288_vm7, %v1062_v50, %v1060_v60  ;;  %v534_v50 = vrot.slane %v1973_v16, 4 }
 0x1d0   :  { %v1065_v21 = vadd.f32 %v1063_v10, %v1057_v6  ;;  %v1066_v22 = vadd.f32 %v1064_v15, %v1058_v9  ;;  %1223 = vrot.lane.b32.xlu0 %v1219_v5, %s1809_s5  ;;  %1225 = vrot.lane.b32.xlu1 %v1220_v54, %s1809_s5  ;;  %v535_v5 = vrot.slane %v1979_v19, 4  ;;  %v545_v9 = vrot.slane %v1973_v16, 5 }
 0x1d1   :  { %v546_v10 = vrot.slane %v1979_v19, 5 }
 0x1d2   :  { %v2198_v23 = vpop.permute.xlu0 %299  ;;  %v2200_v24 = vpop.permute.xlu1 %301 }
 0x1d4   :  { %484 = vrot.lane.b32.xlu0 %v1973_v16, %s1811_s7  ;;  %486 = vrot.lane.b32.xlu1 %v1979_v19, %s1811_s7 }
 0x1d6   :  { %v2206_v25 = vpop.permute.xlu0 %312  ;;  %v2208_v26 = vpop.permute.xlu1 %314 }
 0x1d8   :  { %499 = vrot.lane.b32.xlu0 %v495_v27, %s1812_s8  ;;  %501 = vrot.lane.b32.xlu1 %v496_v28, %s1812_s8  ;;  %v558_v28 = vrot.slane %v1973_v16, 6 }
 0x1da   :  { %v2214_v29 = vpop.permute.xlu0 %325  ;;  %v2216_v31 = vpop.permute.xlu1 %327 }
 0x1dc   :  { %512 = vrot.lane.b32.xlu0 %v508_v34, %s1813_s0  ;;  %514 = vrot.lane.b32.xlu1 %v509_v35, %s1813_s0  ;;  %v559_v34 = vrot.slane %v1979_v19, 6 }
 0x1de   :  { %v2224_v37 = vpop.permute.xlu0 %338  ;;  %v2226_v38 = vpop.permute.xlu1 %340 }
 0x1e0   :  { %525 = vrot.lane.b32.xlu0 %v521_v43, %s1814_s9  ;;  %527 = vrot.lane.b32.xlu1 %v522_v44, %s1814_s9  ;;  %v571_v44 = vrot.slane %v1973_v16, 7 }
 0x1e2   :  { %v2234_v48 = vpop.permute.xlu0 %351  ;;  %v2236_v60 = vpop.permute.xlu1 %353 }
 0x1e4   :  { %538 = vrot.lane.b32.xlu0 %v534_v50, %s1815_s10  ;;  %540 = vrot.lane.b32.xlu1 %v535_v5, %s1815_s10 }
 0x1e6   :  { %v2242_v54 = vpop.permute.xlu0 %364  ;;  %v2244_v6 = vpop.permute.xlu1 %366 }
 0x1e8   :  { %549 = vrot.lane.b32.xlu0 %v545_v9, %s1816_s11  ;;  %551 = vrot.lane.b32.xlu1 %v546_v10, %s1816_s11  ;;  %v572_v9 = vrot.slane %v1979_v19, 7 }
 0x1ea   :  { %v2250_v15 = vpop.permute.xlu0 %375  ;;  %v2252_v27 = vpop.permute.xlu1 %377 }
 0x1ec   :  { %562 = vrot.lane.b32.xlu0 %v558_v28, %s1817_s1  ;;  %564 = vrot.lane.b32.xlu1 %v559_v34, %s1817_s1 }
 0x1ee   :  { %v1074_v35 = vpop.permute.xlu0 %1073  ;;  %v1076_v43 = vpop.permute.xlu1 %1075 }
 0x1ef   :  { %v1077_v50 = vsel %vm303_vm8, %v1074_v35, %v1076_v43  ;;  %v1078_v5 = vsel %vm303_vm8, %v1076_v43, %v1074_v35 }
 0x1f0   :  { %v1079_v10 = vadd.f32 %v1077_v50, %v1065_v21  ;;  %v1080_v0 = vadd.f32 %v1078_v5, %v1066_v22  ;;  %575 = vrot.lane.b32.xlu0 %v571_v44, %s1818_s12  ;;  %577 = vrot.lane.b32.xlu1 %v572_v9, %s1818_s12  ;;  %v595_v22 = vrot.slane %v2005_v30, 1 }
 0x1f2   :  { %v1086_v28 = vpop.permute.xlu0 %1085  ;;  %v1088_v34 = vpop.permute.xlu1 %1087 }
 0x1f3   :  { %v1089_v16 = vsel %vm316_vm9, %v1086_v28, %v1088_v34  ;;  %v1090_v11 = vsel %vm316_vm9, %v1088_v34, %v1086_v28  ;;  %v608_v28 = vrot.slane %v2005_v30, 2 }
 0x1f4   :  { %v1091_v35 = vadd.f32 %v1089_v16, %v1079_v10  ;;  %v1092_v43 = vadd.f32 %v1090_v11, %v1080_v0  ;;  %584 = vrot.lane.b32.xlu0 %v2005_v30, %s1819_s13  ;;  %586 = vrot.lane.b32.xlu1 %v2011_v33, %s1819_s13  ;;  %v596_v0 = vrot.slane %v2011_v33, 1 }
 0x1f6   :  { %v1098_v19 = vpop.permute.xlu0 %1097  ;;  %v1100_v21 = vpop.permute.xlu1 %1099 }
 0x1f7   :  { %v1101_v44 = vsel %vm329_vm10, %v1098_v19, %v1100_v21  ;;  %v1102_v50 = vsel %vm329_vm10, %v1100_v21, %v1098_v19 }
 0x1f8   :  { %v1103_v11 = vadd.f32 %v1101_v44, %v1091_v35  ;;  %v1104_v5 = vadd.f32 %v1102_v50, %v1092_v43  ;;  %599 = vrot.lane.b32.xlu0 %v595_v22, %s1820_s14  ;;  %601 = vrot.lane.b32.xlu1 %v596_v0, %s1820_s14  ;;  %v609_v35 = vrot.slane %v2011_v33, 2  ;;  %v621_v44 = vrot.slane %v2005_v30, 3 }
 0x1fa   :  { %v1110_v9 = vpop.permute.xlu0 %1109  ;;  %v1112_v10 = vpop.permute.xlu1 %1111 }
 0x1fb   :  { %v1113_v34 = vsel %vm342_vm11, %v1110_v9, %v1112_v10  ;;  %v1114_v16 = vsel %vm342_vm11, %v1112_v10, %v1110_v9 }
 0x1fc   :  { %v1115_v43 = vadd.f32 %v1113_v34, %v1103_v11  ;;  %v1116_v19 = vadd.f32 %v1114_v16, %v1104_v5  ;;  %612 = vrot.lane.b32.xlu0 %v608_v28, %s1821_s15  ;;  %614 = vrot.lane.b32.xlu1 %v609_v35, %s1821_s15  ;;  %v622_v11 = vrot.slane %v2011_v33, 3  ;;  %v632_v35 = vrot.slane %v2005_v30, 4 }
 0x1fe   :  { %v1122_v21 = vpop.permute.xlu0 %1121  ;;  %v1124_v22 = vpop.permute.xlu1 %1123 }
 0x1ff   :  { %v1125_v50 = vsel %vm355_vm12, %v1122_v21, %v1124_v22  ;;  %v1126_v0 = vsel %vm355_vm12, %v1124_v22, %v1122_v21  ;;  %v633_v21 = vrot.slane %v2011_v33, 4 }
 0x200   :  { %v1127_v5 = vadd.f32 %v1125_v50, %v1115_v43  ;;  %v1128_v9 = vadd.f32 %v1126_v0, %v1116_v19  ;;  %625 = vrot.lane.b32.xlu0 %v621_v44, %s1822_s16  ;;  %627 = vrot.lane.b32.xlu1 %v622_v11, %s1822_s16  ;;  %v646_v19 = vrot.slane %v2011_v33, 5 }
 0x202   :  { %v2304_v10 = vadd.f32 %v1127_v5, %v2160_v49  ;;  %v2307_v28 = vadd.f32 %v1128_v9, %v2162_v53  ;;  %v1134_v34 = vpop.permute.xlu0 %1133  ;;  %v1136_v16 = vpop.permute.xlu1 %1135  ;;  %v645_v53 = vrot.slane %v2005_v30, 5 }
 0x203   :  { %v1137_v22 = vsel %vm368_vm13, %v1134_v34, %v1136_v16  ;;  %v1138_v44 = vsel %vm368_vm13, %v1136_v16, %v1134_v34  ;;  %v659_v34 = vrot.slane %v2011_v33, 6 }
 0x204   :  { %3219 = vst [vmem:[#allocation14_spill] sm:$0xff] %v2304_v10  ;;  %3220 = vst [vmem:[#allocation15_spill] sm:$0xff] %v2307_v28  ;;  %636 = vrot.lane.b32.xlu0 %v632_v35, %s1823_s17  ;;  %638 = vrot.lane.b32.xlu1 %v633_v21, %s1823_s17  ;;  %v658_v21 = vrot.slane %v2005_v30, 6  ;;  %v720_v28 = vrot.slane %v2051_v63, 3 }
 0x206   :  { %v1144_v49 = vpop.permute.xlu0 %1143  ;;  %v1146_v43 = vpop.permute.xlu1 %1145 }
 0x207   :  { %v1147_v50 = vsel %vm379_vm14, %v1144_v49, %v1146_v43  ;;  %v1148_v0 = vsel %vm379_vm14, %v1146_v43, %v1144_v49  ;;  %v671_v43 = vrot.slane %v2005_v30, 7 }
 0x208   :  { %v1149_v11 = vadd.f32 %v1147_v50, %v1137_v22  ;;  %v1150_v5 = vadd.f32 %v1148_v0, %v1138_v44  ;;  %649 = vrot.lane.b32.xlu0 %v645_v53, %s1824_s18  ;;  %651 = vrot.lane.b32.xlu1 %v646_v19, %s1824_s18  ;;  %v672_v22 = vrot.slane %v2011_v33, 7 }
 0x20a   :  { %v2327_v9 = vpop.permute.xlu0 %384  ;;  %v2329_v35 = vpop.permute.xlu1 %386 }
 0x20c   :  { %662 = vrot.lane.b32.xlu0 %v658_v21, %s1825_s19  ;;  %664 = vrot.lane.b32.xlu1 %v659_v34, %s1825_s19  ;;  %v696_v21 = vrot.slane %v2051_v63, 1  ;;  %v2364_v34 = vpop.f32.mrb[12].mxu1 }
 0x20d   :  { %3224 = vst [vmem:[#allocation19_spill] sm:$0xff] %v2364_v34 }
 0x20e   :  { %v1152_v16 = vpop.permute.xlu0 %1151  ;;  %v1154_v49 = vpop.permute.xlu1 %1153 }
 0x20f   :  { %v1155_v53 = vsel %vm3196_vm15, %v1152_v16, %v1154_v49  ;;  %v1156_v19 = vsel %vm3196_vm15, %v1154_v49, %v1152_v16  ;;  %vm403_vm15 = vcmp.lt.s32.totalorder %v2090_v17, 93 }
 0x210   :  { %v2342_v44 = vadd.f32 %v1155_v53, %v1149_v11  ;;  %v2344_v50 = vadd.f32 %v1156_v19, %v1150_v5  ;;  %675 = vrot.lane.b32.xlu0 %v671_v43, %s1826_s20  ;;  %677 = vrot.lane.b32.xlu1 %v672_v22, %s1826_s20  ;;  %v695_v5 = vrot.slane %v2041_v52, 1  ;;  %v708_v43 = vrot.slane %v2041_v52, 2  ;;  %v2372_v19 = vpop.f32.mrb[13].mxu1 }
 0x211   :  { %v709_v53 = vrot.slane %v2051_v63, 2  ;;  %3227 = vst [vmem:[#allocation22_spill] sm:$0xff] %v2372_v19 }
 0x212   :  { %v2348_v0 = vpop.permute.xlu0 %399  ;;  %v2350_v30 = vpop.permute.xlu1 %401 }
 0x213   :  { %3221 = vst [vmem:[#allocation16_spill] sm:$0xff] %v2348_v0 }
 0x214   :  { %684 = vrot.lane.b32.xlu0 %v2041_v52, %s1827_s21  ;;  %686 = vrot.lane.b32.xlu1 %v2051_v63, %s1827_s21 }
 0x216   :  { %v2356_v33 = vpop.permute.xlu0 %412  ;;  %v2358_v11 = vpop.permute.xlu1 %414 }
 0x217   :  { %3222 = vst [vmem:[#allocation17_spill] sm:$0xff] %v2356_v33  ;;  %3223 = vst [vmem:[#allocation18_spill] sm:$0xff] %v2358_v11 }
 0x218   :  { %699 = vrot.lane.b32.xlu0 %v695_v5, %s1828_s22  ;;  %701 = vrot.lane.b32.xlu1 %v696_v21, %s1828_s22  ;;  %v719_v21 = vrot.slane %v2041_v52, 3 }
 0x21a   :  { %v2366_v16 = vpop.permute.xlu0 %425  ;;  %v2368_v49 = vpop.permute.xlu1 %427 }
 0x21b   :  { %3225 = vst [vmem:[#allocation20_spill] sm:$0xff] %v2366_v16  ;;  %3226 = vst [vmem:[#allocation21_spill] sm:$0xff] %v2368_v49  ;;  %v204_v49 = vsel %vm203_vm0, %v2045_v57, %v2166_v39 }
 0x21c   :  { %712 = vrot.lane.b32.xlu0 %v708_v43, %s1829_s23  ;;  %714 = vrot.lane.b32.xlu1 %v709_v53, %s1829_s23  ;;  %v732_v43 = vrot.slane %v2041_v52, 4  ;;  %v733_v53 = vrot.slane %v2051_v63, 4  ;;  %v206_v11 = vadd.f32 %v204_v49, %v1897_v41  ;;  %v217_v41 = vsel %vm216_vm1, %v2043_v56, %v2055_v2 }
 0x21e   :  { %v2376_v22 = vpop.permute.xlu0 %438  ;;  %v2378_v5 = vpop.permute.xlu1 %440  ;;  %v219_v49 = vadd.f32 %v217_v41, %v206_v11  ;;  %v243_v11 = vsel %vm242_vm3, %v2059_v3, %v2067_v4  ;;  %v1265_v41 = vrot.slane %v2131_v61, 2 }
 0x21f   :  { %3228 = vst [vmem:[#allocation23_spill] sm:$0xff] %v2376_v22  ;;  %3229 = vst [vmem:[#allocation24_spill] sm:$0xff] %v2378_v5 }
 0x220   :  { %723 = vrot.lane.b32.xlu0 %v719_v21, %s1830_s24  ;;  %725 = vrot.lane.b32.xlu1 %v720_v28, %s1830_s24  ;;  %v745_v21 = vrot.slane %v2041_v52, 5  ;;  %v746_v28 = vrot.slane %v2051_v63, 5 }
 0x222   :  { %v2384_v10 = vpop.permute.xlu0 %451  ;;  %v2386_v19 = vpop.permute.xlu1 %453 }
 0x224   :  { %736 = vrot.lane.b32.xlu0 %v732_v43, %s1831_s25  ;;  %738 = vrot.lane.b32.xlu1 %v733_v53, %s1831_s25  ;;  %v758_v43 = vrot.slane %v2041_v52, 6  ;;  %v759_v53 = vrot.slane %v2051_v63, 6 }
 0x226   :  { %v2392_v34 = vpop.permute.xlu0 %462  ;;  %v2394_v47 = vpop.permute.xlu1 %464 }
 0x228   :  { %749 = vrot.lane.b32.xlu0 %v745_v21, %s1832_s26  ;;  %751 = vrot.lane.b32.xlu1 %v746_v28, %s1832_s26  ;;  %v771_v21 = vrot.slane %v2041_v52, 7  ;;  %v772_v28 = vrot.slane %v2051_v63, 7 }
 0x22a   :  { %v2400_v36 = vpop.permute.xlu0 %475  ;;  %v2402_v22 = vpop.permute.xlu1 %477 }
 0x22c   :  { %762 = vrot.lane.b32.xlu0 %v758_v43, %s1833_s27  ;;  %764 = vrot.lane.b32.xlu1 %v759_v53, %s1833_s27  ;;  %v205_v43 = vsel %vm203_vm0, %v2166_v39, %v2045_v57  ;;  %vm3203_vm0 = vcmp.lt.s32.totalorder %v2090_v17, 92 }
 0x22d   :  { %v207_v0 = vadd.f32 %v205_v43, %v1899_v42  ;;  %v218_v42 = vsel %vm216_vm1, %v2055_v2, %v2043_v56  ;;  %v230_v43 = vsel %vm229_vm2, %v2053_v1, %v2061_v55  ;;  %v1232_v2 = vrot.slane %v1937_v62, 7 }
 0x22e   :  { %v1166_v5 = vpop.permute.xlu0 %1165  ;;  %v1168_v16 = vpop.permute.xlu1 %1167  ;;  %vm442_vm1 = vcmp.lt.s32.totalorder %v2090_v17, 90  ;;  %v244_v62 = vsel %vm242_vm3, %v2067_v4, %v2059_v3  ;;  %v2490_v3 = vsel %vm268_vm5, %v2083_v13, %v2073_v7  ;;  %v232_v4 = vadd.f32 %v230_v43, %v219_v49 }
 0x22f   :  { %v1169_v53 = vsel %vm403_vm15, %v1166_v5, %v1168_v16  ;;  %v1170_v33 = vsel %vm403_vm15, %v1168_v16, %v1166_v5  ;;  %v220_v5 = vadd.f32 %v218_v42, %v207_v0  ;;  %vm466_vm3 = vcmp.lt.s32.totalorder %v2090_v17, 79 }
 0x230   :  { %v1171_v52 = vadd.f32 %v1169_v53, %v2342_v44  ;;  %v1172_v63 = vadd.f32 %v1170_v33, %v2344_v50  ;;  %775 = vrot.lane.b32.xlu0 %v771_v21, %s1834_s28  ;;  %777 = vrot.lane.b32.xlu1 %v772_v28, %s1834_s28  ;;  %v1266_v42 = vrot.slane %v2140_v14, 2  ;;  %v245_v49 = vadd.f32 %v243_v11, %v232_v4 }
 0x231   :  { %v1300_v11 = vrot.slane %v2140_v14, 5 }
 0x232   :  { %v1178_v57 = vpop.permute.xlu0 %1177  ;;  %v1180_v39 = vpop.permute.xlu1 %1179 }
 0x233   :  { %v1181_v16 = vsel %vm3203_vm0, %v1178_v57, %v1180_v39  ;;  %v1182_v44 = vsel %vm3203_vm0, %v1180_v39, %v1178_v57  ;;  %vm429_vm0 = vcmp.lt.s32.totalorder %v2090_v17, 91 }
 0x234   :  { %v1183_v50 = vadd.f32 %v1181_v16, %v1171_v52  ;;  %v1184_v33 = vadd.f32 %v1182_v44, %v1172_v63  ;;  %784 = vrot.lane.b32.xlu0 %v2109_v32, %s1835_s29  ;;  %786 = vrot.lane.b32.xlu1 %v2120_v40, %s1835_s29  ;;  %v1231_v32 = vrot.slane %v1933_v59, 7  ;;  %v231_v40 = vsel %vm229_vm2, %v2061_v55, %v2053_v1 }
 0x235   :  { %v256_v1 = vsel %vm255_vm4, %v2065_v58, %v2075_v8  ;;  %v257_v55 = vsel %vm255_vm4, %v2075_v8, %v2065_v58  ;;  %v2484_v52 = vsel %vm268_vm5, %v2073_v7, %v2083_v13  ;;  %v233_v63 = vadd.f32 %v231_v40, %v220_v5 }
 0x236   :  { %v1190_v21 = vpop.permute.xlu0 %1189  ;;  %v1192_v28 = vpop.permute.xlu1 %1191  ;;  %v282_v58 = vsel %vm281_vm6, %v2081_v12, %v2092_v20  ;;  %v283_v8 = vsel %vm281_vm6, %v2092_v20, %v2081_v12  ;;  %vm455_vm2 = vcmp.lt.s32.totalorder %v2090_v17, 80  ;;  %v289_v16 = vsel %vm288_vm7, %v2172_v45, %v2174_v46 }
 0x237   :  { %v1193_v53 = vsel %vm429_vm0, %v1190_v21, %v1192_v28  ;;  %v1194_v56 = vsel %vm429_vm0, %v1192_v28, %v1190_v21  ;;  %v290_v12 = vsel %vm288_vm7, %v2174_v46, %v2172_v45  ;;  %v246_v45 = vadd.f32 %v244_v62, %v233_v63 }
 0x238   :  { %v1195_v59 = vadd.f32 %v1193_v53, %v1183_v50  ;;  %v1196_v0 = vadd.f32 %v1194_v56, %v1184_v33  ;;  %1235 = vrot.lane.b32.xlu0 %v1231_v32, %s1810_s6  ;;  %1237 = vrot.lane.b32.xlu1 %v1232_v2, %s1810_s6  ;;  %v1253_v50 = vrot.slane %v2131_v61, 1  ;;  %v1254_v33 = vrot.slane %v2140_v14, 1 }
 0x239   :  { %v304_v46 = vsel %vm303_vm8, %v2198_v23, %v2200_v24  ;;  %v305_v5 = vsel %vm303_vm8, %v2200_v24, %v2198_v23  ;;  %v291_v28 = vadd.f32 %v289_v16, %v282_v58  ;;  %v292_v32 = vadd.f32 %v290_v12, %v283_v8 }
 0x23a   :  { %v1202_v57 = vpop.permute.xlu0 %1201  ;;  %v1204_v39 = vpop.permute.xlu1 %1203  ;;  %vm479_vm4 = vcmp.lt.s32.totalorder %v2090_v17, 78  ;;  %v1277_v53 = vrot.slane %v2131_v61, 3  ;;  %v1289_v56 = vrot.slane %v2131_v61, 4  ;;  %v317_v2 = vsel %vm316_vm9, %v2206_v25, %v2208_v26 }
 0x23b   :  { %v1205_v7 = vsel %vm442_vm1, %v1202_v57, %v1204_v39  ;;  %v1206_v13 = vsel %vm442_vm1, %v1204_v39, %v1202_v57  ;;  %v318_v23 = vsel %vm316_vm9, %v2208_v26, %v2206_v25  ;;  %v1290_v24 = vrot.slane %v2140_v14, 4 }
 0x23c   :  { %v2514_v20 = vadd.f32 %v1205_v7, %v1195_v59  ;;  %v2516_v44 = vadd.f32 %v1206_v13, %v1196_v0  ;;  %1243 = vrot.lane.b32.xlu0 %v2131_v61, %s1811_s7  ;;  %1245 = vrot.lane.b32.xlu1 %v2140_v14, %s1811_s7  ;;  %v1299_v40 = vrot.slane %v2131_v61, 5  ;;  %v306_v59 = vadd.f32 %v304_v46, %v291_v28 }
 0x23d   :  { %v307_v0 = vadd.f32 %v305_v5, %v292_v32  ;;  %vm488_vm5 = vcmp.lt.s32.totalorder %v2090_v17, 77  ;;  %v330_v62 = vsel %vm329_vm10, %v2214_v29, %v2216_v31  ;;  %v331_v25 = vsel %vm329_vm10, %v2216_v31, %v2214_v29 }
 0x23e   :  { %v1214_v21 = vpop.permute.xlu0 %1213  ;;  %v1216_v43 = vpop.permute.xlu1 %1215  ;;  %v258_v26 = vadd.f32 %v256_v1, %v245_v49  ;;  %v2559_v4 = vadd.f32 %v257_v55, %v246_v45  ;;  %v319_v57 = vadd.f32 %v317_v2, %v306_v59  ;;  %v343_v58 = vsel %vm342_vm11, %v2224_v37, %v2226_v38  ;;  %v3232_v59 = vld [vmem:[#allocation16_spill] sm:$0xff] }
 0x23f   :  { %v320_v39 = vadd.f32 %v318_v23, %v307_v0  ;;  %v344_v8 = vsel %vm342_vm11, %v2226_v38, %v2224_v37  ;;  %vm3210_vm6 = vcmp.lt.s32.totalorder %v2090_v17, 76  ;;  %v1217_v29 = vsel %vm455_vm2, %v1214_v21, %v1216_v43 }
 0x240   :  { %1257 = vrot.lane.b32.xlu0 %v1253_v50, %s1812_s8  ;;  %1259 = vrot.lane.b32.xlu1 %v1254_v33, %s1812_s8  ;;  %v1218_v31 = vsel %vm455_vm2, %v1216_v43, %v1214_v21  ;;  %v332_v13 = vadd.f32 %v330_v62, %v319_v57  ;;  %vm3209_vm7 = vcmp.lt.s32.totalorder %v2090_v17, 75  ;;  %v2586_v12 = vadd.f32 %v2484_v52, %v258_v26 }
 0x241   :  { %v333_v16 = vadd.f32 %v331_v25, %v320_v39  ;;  %v1369_v33 = vrot.slane %v2180_v51, 3  ;;  %v1370_v49 = vrot.slane %v2194_v18, 3  ;;  %v356_v5 = vsel %vm355_vm12, %v2234_v48, %v2236_v60 }
 0x242   :  { %v1224_v63 = vpop.permute.xlu0 %1223  ;;  %v1226_v7 = vpop.permute.xlu1 %1225  ;;  %v345_v45 = vadd.f32 %v343_v58, %v332_v13  ;;  %v357_v52 = vsel %vm355_vm12, %v2236_v60, %v2234_v48  ;;  %v380_v21 = vsel %vm379_vm14, %v2250_v15, %v2252_v27  ;;  %v381_v28 = vsel %vm379_vm14, %v2252_v27, %v2250_v15  ;;  %v3238_v13 = vld [vmem:[#allocation20_spill] sm:$0xff] }
 0x243   :  { %v1227_v1 = vsel %vm466_vm3, %v1224_v63, %v1226_v7  ;;  %v1228_v55 = vsel %vm466_vm3, %v1226_v7, %v1224_v63  ;;  %v346_v46 = vadd.f32 %v344_v8, %v333_v16  ;;  %v467_v32 = vsel %vm466_vm3, %v2392_v34, %v2394_v47  ;;  %v3233_v63 = vld [vmem:[#allocation18_spill] sm:$0xff] }
 0x244   :  { %1269 = vrot.lane.b32.xlu0 %v1265_v41, %s1813_s0  ;;  %v2579_v37 = vadd.f32 %v1227_v1, %v1217_v29  ;;  %v2581_v38 = vadd.f32 %v1228_v55, %v1218_v31  ;;  %1271 = vrot.lane.b32.xlu1 %v1266_v42, %s1813_s0  ;;  %v1379_v41 = vrot.slane %v2180_v51, 4  ;;  %v468_v48 = vsel %vm466_vm3, %v2394_v47, %v2392_v34  ;;  %v3237_v55 = vld [vmem:[#allocation21_spill] sm:$0xff] }
 0x245   :  { %v369_v60 = vsel %vm368_vm13, %v2242_v54, %v2244_v6  ;;  %v370_v15 = vsel %vm368_vm13, %v2244_v6, %v2242_v54  ;;  %vm3230_vm8 = vcmp.lt.s32.totalorder %v2090_v17, 94  ;;  %vm3204_vm10 = vcmp.lt.s32.totalorder %v2090_v17, 74 }
 0x246   :  { %v485_v50 = vpop.permute.xlu0 %484  ;;  %v487_v42 = vpop.permute.xlu1 %486  ;;  %v389_v27 = vsel %vm3230_vm8, %v2327_v9, %v2329_v35  ;;  %vm3231_vm9 = vmmov %vm3230_vm8  ;;  %v456_v34 = vsel %vm455_vm2, %v2384_v10, %v2386_v19  ;;  %v457_v54 = vsel %vm455_vm2, %v2386_v19, %v2384_v10  ;;  %v480_v6 = vsel %vm479_vm4, %v2400_v36, %v2402_v22 }
 0x247   :  { %v390_v47 = vsel %vm3231_vm9, %v2329_v35, %v2327_v9  ;;  %v481_v9 = vsel %vm479_vm4, %v2402_v22, %v2400_v36  ;;  %v382_v43 = vadd.f32 %v380_v21, %v369_v60  ;;  %v470_v2 = vadd.f32 %v468_v48, %v457_v54 }
 0x248   :  { %1281 = vrot.lane.b32.xlu0 %v1277_v53, %s1814_s9  ;;  %1293 = vrot.lane.b32.xlu1 %v1289_v56, %s1815_s10  ;;  %v383_v53 = vadd.f32 %v381_v28, %v370_v15  ;;  %v469_v56 = vadd.f32 %v467_v32, %v456_v34  ;;  %v404_v10 = vsel %vm403_vm15, %v3232_v59, %v2350_v30  ;;  %vm3235_vm11 = vcmp.lt.s32.totalorder %v2090_v17, 92  ;;  %v3240_v34 = vld [vmem:[#allocation23_spill] sm:$0xff] }
 0x249   :  { %v405_v19 = vsel %vm403_vm15, %v2350_v30, %v3232_v59  ;;  %v489_v0 = vsel %vm488_vm5, %v485_v50, %v487_v42  ;;  %v490_v36 = vsel %vm488_vm5, %v487_v42, %v485_v50  ;;  %v391_v22 = vadd.f32 %v389_v27, %v382_v43  ;;  %v3234_v30 = vld [vmem:[#allocation17_spill] sm:$0xff]  ;;  %vm3236_vm12 = vmmov %vm3235_vm11 }
 0x24a   :  { %v500_v35 = vpop.permute.xlu0 %499  ;;  %v502_v23 = vpop.permute.xlu1 %501  ;;  %v392_v62 = vadd.f32 %v390_v47, %v383_v53  ;;  %v482_v25 = vadd.f32 %v480_v6, %v469_v56  ;;  %v483_v26 = vadd.f32 %v481_v9, %v470_v2  ;;  %v417_v57 = vsel %vm3235_vm11, %v3234_v30, %v3233_v63  ;;  %v3239_v47 = vld [vmem:[#allocation24_spill] sm:$0xff] }
 0x24b   :  { %v418_v39 = vsel %vm3236_vm12, %v3233_v63, %v3234_v30  ;;  %v505_v58 = vsel %vm3210_vm6, %v502_v23, %v500_v35  ;;  %v406_v7 = vadd.f32 %v404_v10, %v391_v22  ;;  %v430_v16 = vsel %vm429_vm0, %v3238_v13, %v3237_v55 }
 0x24c   :  { %1295 = vrot.lane.b32.xlu0 %v1290_v24, %s1815_s10  ;;  %1303 = vrot.lane.b32.xlu1 %v1299_v40, %s1816_s11  ;;  %v504_v24 = vsel %vm3210_vm6, %v500_v35, %v502_v23  ;;  %v407_v29 = vadd.f32 %v405_v19, %v392_v62  ;;  %v491_v40 = vadd.f32 %v489_v0, %v482_v25  ;;  %vm3208_vm13 = vcmp.lt.s32.totalorder %v2090_v17, 64 }
 0x24d   :  { %v492_v31 = vadd.f32 %v490_v36, %v483_v26  ;;  %v431_v50 = vsel %vm429_vm0, %v3237_v55, %v3238_v13  ;;  %v419_v28 = vadd.f32 %v417_v57, %v406_v7  ;;  %v358_v15 = vadd.f32 %v356_v5, %v345_v45  ;;  %v3242_v55 = vld [vmem:[#allocation13_spill] sm:$0xff] }
 0x24e   :  { %v513_v8 = vpop.permute.xlu0 %512  ;;  %v515_v1 = vpop.permute.xlu1 %514  ;;  %v420_v32 = vadd.f32 %v418_v39, %v407_v29  ;;  %v506_v48 = vadd.f32 %v504_v24, %v491_v40  ;;  %v359_v27 = vadd.f32 %v357_v52, %v346_v46  ;;  %v443_v54 = vsel %vm442_vm1, %v3240_v34, %v3239_v47 }
 0x24f   :  { %v517_v42 = vsel %vm3209_vm7, %v513_v8, %v515_v1  ;;  %v518_v21 = vsel %vm3209_vm7, %v515_v1, %v513_v8  ;;  %v507_v60 = vadd.f32 %v505_v58, %v492_v31  ;;  %v444_v6 = vsel %vm442_vm1, %v3239_v47, %v3240_v34  ;;  %v3241_v8 = vld [vmem:[#allocation12_spill] sm:$0xff] }
 0x250   :  { %1305 = vrot.lane.b32.xlu0 %v1300_v11, %s1816_s11  ;;  %1373 = vrot.lane.b32.xlu1 %v1369_v33, %s1822_s16  ;;  %v432_v11 = vadd.f32 %v430_v16, %v419_v28  ;;  %v433_v35 = vadd.f32 %v431_v50, %v420_v32  ;;  %v519_v43 = vadd.f32 %v517_v42, %v506_v48  ;;  %v1311_v59 = vrot.slane %v2131_v61, 6 }
 0x251   :  { %v520_v53 = vadd.f32 %v518_v21, %v507_v60  ;;  %v272_v33 = vadd.f32 %v2490_v3, %v2559_v4  ;;  %v1380_v4 = vrot.slane %v2194_v18, 4  ;;  %v793_v10 = vadd.f32 %v358_v15, %v2586_v12 }
 0x252   :  { %v526_v9 = vpop.permute.xlu0 %525  ;;  %v528_v56 = vpop.permute.xlu1 %527  ;;  %v445_v5 = vadd.f32 %v443_v54, %v432_v11  ;;  %v446_v52 = vadd.f32 %v444_v6, %v433_v35  ;;  %vm3207_vm14 = vcmp.lt.s32.totalorder %v2090_v17, 63  ;;  %v1312_v26 = vrot.slane %v2140_v14, 6 }
 0x253   :  { %v530_v45 = vsel %vm3204_vm10, %v526_v9, %v528_v56  ;;  %v531_v46 = vsel %vm3204_vm10, %v528_v56, %v526_v9  ;;  %v794_v19 = vadd.f32 %v359_v27, %v272_v33  ;;  %v1391_v30 = vrot.slane %v2180_v51, 5 }
 0x254   :  { %1375 = vrot.lane.b32.xlu0 %v1370_v49, %s1822_s16  ;;  %v532_v2 = vadd.f32 %v530_v45, %v519_v43  ;;  %v533_v23 = vadd.f32 %v531_v46, %v520_v53  ;;  %1383 = vrot.lane.b32.xlu1 %v1379_v41, %s1823_s17  ;;  %v1449_v7 = vrot.slane %v3241_v8, 2  ;;  %v1392_v40 = vrot.slane %v2194_v18, 5 }
 0x255   :  { %v1450_v13 = vrot.slane %v3242_v55, 2  ;;  %v1459_v50 = vrot.slane %v3241_v8, 3  ;;  %v1460_v21 = vrot.slane %v3242_v55, 3  ;;  %v1323_v32 = vrot.slane %v2131_v61, 7 }
 0x256   :  { %v539_v3 = vpop.permute.xlu0 %538  ;;  %v795_v0 = vadd.f32 %v532_v2, %v445_v5  ;;  %v796_v49 = vadd.f32 %v533_v23, %v446_v52  ;;  %v541_v36 = vpop.permute.xlu1 %540  ;;  %v1324_v60 = vrot.slane %v2140_v14, 7  ;;  %v1403_v27 = vrot.slane %v2180_v51, 6 }
 0x257   :  { %v543_v22 = vsel %vm3208_vm13, %v539_v3, %v541_v36  ;;  %v544_v62 = vsel %vm3208_vm13, %v541_v36, %v539_v3  ;;  %v1404_v61 = vrot.slane %v2194_v18, 6  ;;  %v1471_v54 = vrot.slane %v3241_v8, 4 }
 0x258   :  { %1385 = vrot.lane.b32.xlu0 %v1380_v4, %s1823_s17  ;;  %v2725_v41 = vadd.f32 %v795_v0, %v793_v10  ;;  %v2727_v25 = vadd.f32 %v796_v49, %v794_v19  ;;  %1315 = vrot.lane.b32.xlu1 %v1311_v59, %s1817_s1  ;;  %v1472_v9 = vrot.slane %v3242_v55, 4  ;;  %v1415_v53 = vrot.slane %v2180_v51, 7 }
 0x259   :  { %v1416_v33 = vrot.slane %v2194_v18, 7  ;;  %v1483_v46 = vrot.slane %v3241_v8, 5  ;;  %v1484_v52 = vrot.slane %v3242_v55, 5  ;;  %v1345_v23 = vrot.slane %v2180_v51, 1 }
 0x25a   :  { %v550_v12 = vpop.permute.xlu0 %549  ;;  %v552_v63 = vpop.permute.xlu1 %551  ;;  %v1346_v4 = vrot.slane %v2194_v18, 1  ;;  %v1495_v0 = vrot.slane %v3241_v8, 6  ;;  %v1496_v36 = vrot.slane %v3242_v55, 6  ;;  %vm3205_vm15 = vcmp.lt.s32.totalorder %v2090_v17, 62 }
 0x25b   :  { %v554_v57 = vsel %vm3207_vm14, %v550_v12, %v552_v63  ;;  %v555_v39 = vsel %vm3207_vm14, %v552_v63, %v550_v12  ;;  %vm3206_vm0 = vcmp.lt.s32.totalorder %v2090_v17, 61  ;;  %vm3211_vm1 = vcmp.lt.s32.totalorder %v2090_v17, 60 }
 0x25c   :  { %1317 = vrot.lane.b32.xlu0 %v1312_v26, %s1817_s1  ;;  %v2738_v24 = vadd.f32 %v554_v57, %v543_v22  ;;  %v2740_v58 = vadd.f32 %v555_v39, %v544_v62  ;;  %1395 = vrot.lane.b32.xlu1 %v1391_v30, %s1824_s18  ;;  %v1278_v62 = vrot.slane %v2140_v14, 3  ;;  %v1357_v26 = vrot.slane %v2180_v51, 2 }
 0x25d   :  { %v1358_v30 = vrot.slane %v2194_v18, 2  ;;  %v1437_v14 = vrot.slane %v3241_v8, 1  ;;  %v1438_v57 = vrot.slane %v3242_v55, 1  ;;  %v1507_v39 = vrot.slane %v3241_v8, 7 }
 0x25e   :  { %v2744_v29 = vpop.permute.xlu0 %562  ;;  %v2747_v31 = vpop.permute.xlu1 %564  ;;  %vm3212_vm2 = vcmp.lt.s32.totalorder %v2090_v17, 59  ;;  %vm629_vm3 = vcmp.lt.s32.totalorder %v2090_v17, 48  ;;  %vm640_vm8 = vcmp.lt.s32.totalorder %v2090_v17, 47  ;;  %vm653_vm9 = vcmp.lt.s32.totalorder %v2090_v17, 46 }
 0x25f   :  { %vm3213_vm11 = vcmp.lt.s32.totalorder %v2090_v17, 45  ;;  %vm679_vm12 = vcmp.lt.s32.totalorder %v2090_v17, 44  ;;  %vm688_vm10 = vcmp.lt.s32.totalorder %v2090_v17, 43  ;;  %vm740_vm14 = vcmp.lt.s32.totalorder %v2090_v17, 30 }
 0x260   :  { %1397 = vrot.lane.b32.xlu0 %v1392_v40, %s1824_s18  ;;  %1453 = vrot.lane.b32.xlu1 %v1449_v7, %s1829_s23  ;;  %v1508_v40 = vrot.slane %v3242_v55, 7  ;;  %vm703_vm13 = vcmp.lt.s32.totalorder %v2090_v17, 42  ;;  %vm753_vm7 = vcmp.lt.s32.totalorder %v2090_v17, 29  ;;  %vm3216_vm6 = vcmp.lt.s32.totalorder %v2090_v17, 28 }
 0x262   :  { %v2751_v1 = vpop.permute.xlu0 %575  ;;  %v2754_v16 = vpop.permute.xlu1 %577 }
 0x264   :  { %1455 = vrot.lane.b32.xlu0 %v1450_v13, %s1829_s23  ;;  %1463 = vrot.lane.b32.xlu1 %v1459_v50, %s1830_s24  ;;  %v580_v13 = vsel %vm3206_vm0, %v2751_v1, %v2754_v16 }
 0x266   :  { %v2759_v42 = vpop.permute.xlu0 %584  ;;  %v2762_v28 = vpop.permute.xlu1 %586 }
 0x268   :  { %1465 = vrot.lane.b32.xlu0 %v1460_v21, %s1830_s24  ;;  %1327 = vrot.lane.b32.xlu1 %v1323_v32, %s1818_s12 }
 0x26a   :  { %v2767_v48 = vpop.permute.xlu0 %599  ;;  %v2770_v15 = vpop.permute.xlu1 %601 }
 0x26b   :  { %v604_v32 = vsel %vm3212_vm2, %v2767_v48, %v2770_v15 }
 0x26c   :  { %1329 = vrot.lane.b32.xlu0 %v1324_v60, %s1818_s12  ;;  %1407 = vrot.lane.b32.xlu1 %v1403_v27, %s1825_s19 }
 0x26e   :  { %v2775_v47 = vpop.permute.xlu0 %612  ;;  %v2778_v34 = vpop.permute.xlu1 %614 }
 0x270   :  { %1409 = vrot.lane.b32.xlu0 %v1404_v61, %s1825_s19  ;;  %1475 = vrot.lane.b32.xlu1 %v1471_v54, %s1831_s25 }
 0x272   :  { %v2783_v6 = vpop.permute.xlu0 %625  ;;  %v2786_v11 = vpop.permute.xlu1 %627 }
 0x274   :  { %1477 = vrot.lane.b32.xlu0 %v1472_v9, %s1831_s25  ;;  %1335 = vrot.lane.b32.xlu1 %v2180_v51, %s1819_s13  ;;  %v567_v51 = vsel %vm3205_vm15, %v2744_v29, %v2747_v31 }
 0x276   :  { %v2791_v35 = vpop.permute.xlu0 %636  ;;  %v2793_v43 = vpop.permute.xlu1 %638 }
 0x277   :  { %v642_v60 = vsel %vm640_vm8, %v2793_v43, %v2791_v35 }
 0x278   :  { %1337 = vrot.lane.b32.xlu0 %v2194_v18, %s1819_s13  ;;  %1419 = vrot.lane.b32.xlu1 %v1415_v53, %s1826_s20  ;;  %v568_v18 = vsel %vm3205_vm15, %v2747_v31, %v2744_v29  ;;  %v581_v29 = vsel %vm3206_vm0, %v2754_v16, %v2751_v1  ;;  %v569_v31 = vadd.f32 %v567_v51, %v2738_v24  ;;  %vm716_vm15 = vcmp.lt.s32.totalorder %v2090_v17, 32 }
 0x279   :  { %v589_v1 = vsel %vm3211_vm1, %v2759_v42, %v2762_v28  ;;  %v590_v16 = vsel %vm3211_vm1, %v2762_v28, %v2759_v42  ;;  %vm727_vm0 = vcmp.lt.s32.totalorder %v2090_v17, 31  ;;  %v605_v42 = vsel %vm3212_vm2, %v2770_v15, %v2767_v48 }
 0x27a   :  { %v2799_v56 = vpop.permute.xlu0 %649  ;;  %v2802_v45 = vpop.permute.xlu1 %651  ;;  %v641_v28 = vsel %vm640_vm8, %v2791_v35, %v2793_v43  ;;  %vm616_vm1 = vcmp.lt.s32.totalorder %v2090_v17, 58  ;;  %vm3215_vm2 = vcmp.lt.s32.totalorder %v2090_v17, 27  ;;  %v630_v48 = vsel %vm629_vm3, %v2783_v6, %v2786_v11 }
 0x27b   :  { %v631_v15 = vsel %vm629_vm3, %v2786_v11, %v2783_v6  ;;  %v654_v54 = vsel %vm653_vm9, %v2799_v56, %v2802_v45  ;;  %v655_v9 = vsel %vm653_vm9, %v2802_v45, %v2799_v56  ;;  %v3243_v45 = vld [vmem:[#allocation19_spill] sm:$0xff] }
 0x27c   :  { %1421 = vrot.lane.b32.xlu0 %v1416_v33, %s1826_s20  ;;  %1487 = vrot.lane.b32.xlu1 %v1483_v46, %s1832_s26  ;;  %v643_v33 = vadd.f32 %v641_v28, %v630_v48  ;;  %v644_v46 = vadd.f32 %v642_v60, %v631_v15 }
 0x27e   :  { %v2807_v5 = vpop.permute.xlu0 %662  ;;  %v2810_v2 = vpop.permute.xlu1 %664 }
 0x27f   :  { %v667_v6 = vsel %vm3213_vm11, %v2807_v5, %v2810_v2  ;;  %v668_v11 = vsel %vm3213_vm11, %v2810_v2, %v2807_v5  ;;  %v3244_v2 = vld [vmem:[#allocation22_spill] sm:$0xff]  ;;  %vm3214_vm11 = vcmp.lt.s32.totalorder %v2090_v17, 26 }
 0x280   :  { %1489 = vrot.lane.b32.xlu0 %v1484_v52, %s1832_s26  ;;  %1349 = vrot.lane.b32.xlu1 %v1345_v23, %s1820_s14 }
 0x282   :  { %v2815_v3 = vpop.permute.xlu0 %675  ;;  %v2818_v59 = vpop.permute.xlu1 %677 }
 0x283   :  { %v681_v5 = vsel %vm679_vm12, %v2818_v59, %v2815_v3 }
 0x284   :  { %1351 = vrot.lane.b32.xlu0 %v1346_v4, %s1820_s14  ;;  %1427 = vrot.lane.b32.xlu1 %v3241_v8, %s1827_s21  ;;  %v656_v4 = vadd.f32 %v654_v54, %v643_v33  ;;  %v1836_v54 = vmov 1966171168  }
 0x286   :  { %v2823_v10 = vpop.permute.xlu0 %684  ;;  %v2825_v19 = vpop.permute.xlu1 %686 }
 0x288   :  { %1429 = vrot.lane.b32.xlu0 %v3242_v55, %s1827_s21  ;;  %1499 = vrot.lane.b32.xlu1 %v1495_v0, %s1833_s27  ;;  %v570_v55 = vadd.f32 %v568_v18, %v2740_v58  ;;  %v582_v58 = vadd.f32 %v580_v13, %v569_v31  ;;  %v657_v0 = vadd.f32 %v655_v9, %v644_v46  ;;  %v816_v9 = vunpack.c.l.s4 %v1836_v54 }
 0x28a   :  { %v2831_v49 = vpop.permute.xlu0 %699  ;;  %v2834_v22 = vpop.permute.xlu1 %701  ;;  %v583_v50 = vadd.f32 %v581_v29, %v570_v55  ;;  %v591_v27 = vadd.f32 %v589_v1, %v582_v58 }
 0x28b   :  { %v704_v55 = vsel %vm703_vm13, %v2831_v49, %v2834_v22 }
 0x28c   :  { %1501 = vrot.lane.b32.xlu0 %v1496_v36, %s1833_s27  ;;  %1283 = vrot.lane.b32.xlu1 %v1278_v62, %s1814_s9  ;;  %v592_v61 = vadd.f32 %v590_v16, %v583_v50  ;;  %v606_v43 = vadd.f32 %v604_v32, %v591_v27  ;;  %v680_v36 = vsel %vm679_vm12, %v2815_v3, %v2818_v59 }
 0x28e   :  { %v2839_v12 = vpop.permute.xlu0 %712  ;;  %v2843_v63 = vpop.permute.xlu1 %714  ;;  %v607_v53 = vadd.f32 %v605_v42, %v592_v61  ;;  %v617_v42 = vsel %vm616_vm1, %v2775_v47, %v2778_v34 }
 0x28f   :  { %v717_v62 = vsel %vm716_vm15, %v2839_v12, %v2843_v63 }
 0x290   :  { %1361 = vrot.lane.b32.xlu0 %v1357_v26, %s1821_s15  ;;  %1363 = vrot.lane.b32.xlu1 %v1358_v30, %s1821_s15  ;;  %v718_v26 = vsel %vm716_vm15, %v2843_v63, %v2839_v12  ;;  %v690_v12 = vsel %vm688_vm10, %v2825_v19, %v2823_v10 }
 0x292   :  { %v724_v7 = vpop.permute.xlu0 %723  ;;  %v726_v8 = vpop.permute.xlu1 %725 }
 0x293   :  { %v728_v23 = vsel %vm727_vm0, %v724_v7, %v726_v8  ;;  %v729_v56 = vsel %vm727_vm0, %v726_v8, %v724_v7  ;;  %v689_v7 = vsel %vm688_vm10, %v2823_v10, %v2825_v19  ;;  %v705_v10 = vsel %vm703_vm13, %v2834_v22, %v2831_v49 }
 0x294   :  { %1441 = vrot.lane.b32.xlu0 %v1437_v14, %s1828_s22  ;;  %1443 = vrot.lane.b32.xlu1 %v1438_v57, %s1828_s22  ;;  %v669_v14 = vadd.f32 %v667_v6, %v656_v4  ;;  %v670_v57 = vadd.f32 %v668_v11, %v657_v0  ;;  %v731_v51 = vadd.f32 %v729_v56, %v718_v26  ;;  %v817_v0 = vunpack.c.0.s8 %v816_v9 }
 0x295   :  { %v618_v49 = vsel %vm616_vm1, %v2778_v34, %v2775_v47 }
 0x296   :  { %v737_v24 = vpop.permute.xlu0 %736  ;;  %v739_v21 = vpop.permute.xlu1 %738  ;;  %v682_v8 = vadd.f32 %v680_v36, %v669_v14  ;;  %v683_v13 = vadd.f32 %v681_v5, %v670_v57  ;;  %v620_v33 = vadd.f32 %v618_v49, %v607_v53  ;;  %v3245_v36 = vlaneseq }
 0x297   :  { %v741_v30 = vsel %vm740_vm14, %v737_v24, %v739_v21  ;;  %v742_v3 = vsel %vm740_vm14, %v739_v21, %v737_v24 }
 0x298   :  { %1511 = vrot.lane.b32.xlu0 %v1507_v39, %s1834_s28  ;;  %1513 = vrot.lane.b32.xlu1 %v1508_v40, %s1834_s28  ;;  %v730_v39 = vadd.f32 %v728_v23, %v717_v62  ;;  %v744_v31 = vadd.f32 %v742_v3, %v731_v51  ;;  %v691_v24 = vadd.f32 %v689_v7, %v682_v8  ;;  %v819_v5 = vshrl.u32 %v3245_v36, 7 }
 0x299   :  { %v692_v58 = vadd.f32 %v690_v12, %v683_v13  ;;  %v3012_v62 = vstv %s3187_s2  ;;  %v3246_v7 = vmov 0.0   ;;  %s1837_s2 = smov [#allocation8]  }
 0x29a   :  { %v750_v35 = vpop.permute.xlu0 %749  ;;  %v752_v52 = vpop.permute.xlu1 %751  ;;  %v743_v29 = vadd.f32 %v741_v30, %v730_v39  ;;  %v706_v60 = vadd.f32 %v704_v55, %v691_v24  ;;  %v3022_v51 = vsub.s32 %v817_v0, %v819_v5  ;;  %s1570_s5 = sshll.u32 %s1837_s2, 4  ;;  %s1571_s5 = int_to_ptr.vmem [resolvable:$true] %s1570_s5 }
 0x29b   :  { %v754_v63 = vsel %vm753_vm7, %v750_v35, %v752_v52  ;;  %v755_v40 = vsel %vm753_vm7, %v752_v52, %v750_v35  ;;  %v707_v27 = vadd.f32 %v705_v10, %v692_v58  ;;  %v619_v35 = vadd.f32 %v617_v42, %v606_v43  ;;  %s1753_s6 = scalar_lea.vmem %s1571_s5, 64  ;;  %p1758_p3 = scmp.lt.s32.totalorder %s1571_s5, %s1571_s5 }
 0x29c   :  { %1519 = vrot.lane.b32.xlu0 %v3243_v45, %s1835_s29  ;;  %1521 = vrot.lane.b32.xlu1 %v3244_v2, %s1835_s29  ;;  %v756_v50 = vadd.f32 %v754_v63, %v743_v29  ;;  %v757_v21 = vadd.f32 %v755_v40, %v744_v31  ;;  %p1754_p2 = scmp.ne.s32.totalorder %s1571_s5, %s1753_s6  ;;  %p1759_p4 = scmp.lt.s32.totalorder %s1753_s6, %s1753_s6 }
 0x29d   :  { %v797_v11 = vadd.f32 %v706_v60, %v619_v35  ;;  %v798_v23 = vadd.f32 %v707_v27, %v620_v33 }
 0x29e   :  { %v763_v59 = vpop.permute.xlu0 %762  ;;  %v765_v18 = vpop.permute.xlu1 %764  ;;  %p1760_p5 = por %p1759_p4, %p1758_p3 }
 0x29f   :  { %v767_v19 = vsel %vm3216_vm6, %v763_v59, %v765_v18  ;;  %v768_v1 = vsel %vm3216_vm6, %v765_v18, %v763_v59 }
 0x2a0   :  { %v769_v61 = vadd.f32 %v767_v19, %v756_v50  ;;  %v770_v48 = vadd.f32 %v768_v1, %v757_v21  ;;  %p1761_p6 = pnand %p1760_p5, %p1754_p2 }
 0x2a2   :  { %v776_v16 = vpop.permute.xlu0 %775  ;;  %v778_v32 = vpop.permute.xlu1 %777 }
 0x2a3   :  { %v780_v22 = vsel %vm3215_vm2, %v776_v16, %v778_v32  ;;  %v781_v28 = vsel %vm3215_vm2, %v778_v32, %v776_v16 }
 0x2a4   :  { %v782_v46 = vadd.f32 %v780_v22, %v769_v61  ;;  %v783_v52 = vadd.f32 %v781_v28, %v770_v48 }
 0x2a6   :  { %v785_v15 = vpop.permute.xlu0 %784  ;;  %v787_v6 = vpop.permute.xlu1 %786 }
 0x2a7   :  { %v789_v47 = vsel %vm3214_vm11, %v785_v15, %v787_v6  ;;  %v790_v34 = vsel %vm3214_vm11, %v787_v6, %v785_v15 }
 0x2a8   :  { %v791_v56 = vadd.f32 %v789_v47, %v782_v46  ;;  %v792_v45 = vadd.f32 %v790_v34, %v783_v52 }
 0x2aa   :  { %v1236_v4 = vpop.permute.xlu0 %1235  ;;  %v801_v2 = vadd.f32 %v797_v11, %v791_v56  ;;  %v802_v43 = vadd.f32 %v798_v23, %v792_v45  ;;  %v1238_v53 = vpop.permute.xlu1 %1237 }
 0x2ab   :  { %v1239_v26 = vsel %vm479_vm4, %v1236_v4, %v1238_v53  ;;  %v1240_v30 = vsel %vm479_vm4, %v1238_v53, %v1236_v4  ;;  %vm3247_vm4 = vcmp.lt.s32.totalorder %v2090_v17, 76 }
 0x2ac   :  { %v803_v3 = vadd.f32 %v801_v2, %v2725_v41  ;;  %v804_v59 = vadd.f32 %v802_v43, %v2727_v25  ;;  %v1241_v14 = vadd.f32 %v1239_v26, %v2579_v37  ;;  %v1242_v57 = vadd.f32 %v1240_v30, %v2581_v38 }
 0x2ae   :  { %v1244_v39 = vpop.permute.xlu0 %1243  ;;  %vm806_vm11 = vcmp.gt.f32.partialorder %v803_v3, %v3012_v62  ;;  %vm807_vm2 = vcmp.gt.f32.partialorder %v804_v59, %v3012_v62  ;;  %v1246_v18 = vpop.permute.xlu1 %1245 }
 0x2af   :  { %v1583_v12 = vsel %vm806_vm11, 1.0, %v3246_v7  ;;  %v1584_v63 = vsel %vm807_vm2, 1.0, %v3246_v7  ;;  %v1247_v41 = vsel %vm488_vm5, %v1244_v39, %v1246_v18  ;;  %v1248_v37 = vsel %vm488_vm5, %v1246_v18, %v1244_v39  ;;  %vm3248_vm11 = vmmov %vm3247_vm4 }
 0x2b0   :  { %v814_v25 = vcombine.low %v1583_v12, %v1584_v63  ;;  %v1249_v38 = vadd.f32 %v1247_v41, %v1241_v14  ;;  %v1250_v40 = vadd.f32 %v1248_v37, %v1242_v57  ;;  %vm3038_vm2 = vcmp.lt.s32.totalorder %v3245_v36, 256 }
 0x2b1   :  { %vm3251_vm5 = vcmp.lt.s32.totalorder %v2090_v17, 75 }
 0x2b2   :  { %v1258_v8 = vpop.permute.xlu0 %1257  ;;  %v821_v13 = vrot.slane %v814_v25, %v3022_v51  ;;  %v1260_v29 = vpop.permute.xlu1 %1259 }
 0x2b3   :  { %v1261_v31 = vsel %vm3247_vm4, %v1258_v8, %v1260_v29  ;;  %v1262_v55 = vsel %vm3248_vm11, %v1260_v29, %v1258_v8  ;;  %vm3252_vm4 = vmmov %vm3251_vm5  ;;  %vm3253_vm11 = vcmp.lt.s32.totalorder %v2090_v17, 64 }
 0x2b4   :  { %v1263_v19 = vadd.f32 %v1261_v31, %v1249_v38  ;;  %v1264_v1 = vadd.f32 %v1262_v55, %v1250_v40  ;;  %v828_v16 = vrot.slane %v821_v13, %v3022_v51  ;;  %vm3254_vm6 = vmmov %vm3253_vm11 }
 0x2b6   :  { %v1270_v24 = vpop.permute.xlu0 %1269  ;;  %v1272_v58 = vpop.permute.xlu1 %1271  ;;  %834 = vst.msk [vmem:[#allocation8] sm:$0x3] %vm3038_vm2, %v828_v16 }
 0x2b7   :  { %v1273_v50 = vsel %vm3251_vm5, %v1270_v24, %v1272_v58  ;;  %v1274_v21 = vsel %vm3252_vm4, %v1272_v58, %v1270_v24  ;;  %vm3255_vm5 = vcmp.lt.s32.totalorder %v2090_v17, 63 }
 0x2b8   :  { %v3049_v32 = vadd.f32 %v1273_v50, %v1263_v19  ;;  %v3051_v42 = vadd.f32 %v1274_v21, %v1264_v1  ;;  %vm3256_vm4 = vmmov %vm3255_vm5 }
 0x2ba   :  { %v3053_v49 = vpop.permute.xlu0 %1281  ;;  %v1294_v22 = vpop.permute.xlu1 %1293 }
 0x2be   :  { %v1296_v28 = vpop.permute.xlu0 %1295  ;;  %v1304_v61 = vpop.permute.xlu1 %1303 }
 0x2bf   :  { %v1297_v60 = vsel %vm3253_vm11, %v1294_v22, %v1296_v28  ;;  %v1298_v27 = vsel %vm3254_vm6, %v1296_v28, %v1294_v22  ;;  %vm3257_vm6 = vcmp.lt.s32.totalorder %v2090_v17, 62 }
 0x2c0   :  { %vm3258_vm11 = vmmov %vm3257_vm6 }
 0x2c2   :  { %v1306_v48 = vpop.permute.xlu0 %1305  ;;  %v1374_v9 = vpop.permute.xlu1 %1373 }
 0x2c3   :  { %v1307_v15 = vsel %vm3255_vm5, %v1304_v61, %v1306_v48  ;;  %v1308_v54 = vsel %vm3256_vm4, %v1306_v48, %v1304_v61  ;;  %vm3263_vm5 = vcmp.lt.s32.totalorder %v2090_v17, 60 }
 0x2c4   :  { %v1309_v35 = vadd.f32 %v1307_v15, %v1297_v60  ;;  %v1310_v33 = vadd.f32 %v1308_v54, %v1298_v27  ;;  %vm3264_vm4 = vmmov %vm3263_vm5 }
 0x2c6   :  { %v1376_v46 = vpop.permute.xlu0 %1375  ;;  %v1384_v52 = vpop.permute.xlu1 %1383 }
 0x2c7   :  { %v1377_v25 = vsel %vm629_vm3, %v1374_v9, %v1376_v46  ;;  %v1378_v38 = vsel %vm629_vm3, %v1376_v46, %v1374_v9  ;;  %vm3259_vm3 = vcmp.lt.s32.totalorder %v2090_v17, 61 }
 0x2ca   :  { %v1386_v6 = vpop.permute.xlu0 %1385  ;;  %v1316_v47 = vpop.permute.xlu1 %1315 }
 0x2cb   :  { %v1387_v41 = vsel %vm640_vm8, %v1384_v52, %v1386_v6  ;;  %v1388_v37 = vsel %vm640_vm8, %v1386_v6, %v1384_v52  ;;  %vm3260_vm8 = vmmov %vm3259_vm3 }
 0x2cc   :  { %v1389_v55 = vadd.f32 %v1387_v41, %v1377_v25  ;;  %v1390_v19 = vadd.f32 %v1388_v37, %v1378_v38  ;;  %v3269_v25 = vld [vmem:[#allocation14_spill] sm:$0xff] }
 0x2ce   :  { %v1318_v34 = vpop.permute.xlu0 %1317  ;;  %v1396_v11 = vpop.permute.xlu1 %1395 }
 0x2cf   :  { %v1319_v40 = vsel %vm3257_vm6, %v1316_v47, %v1318_v34  ;;  %v1320_v8 = vsel %vm3258_vm11, %v1318_v34, %v1316_v47  ;;  %vm3267_vm11 = vcmp.lt.s32.totalorder %v2090_v17, 59 }
 0x2d0   :  { %v1321_v21 = vadd.f32 %v1319_v40, %v1309_v35  ;;  %v1322_v22 = vadd.f32 %v1320_v8, %v1310_v33 }
 0x2d2   :  { %v1398_v23 = vpop.permute.xlu0 %1397  ;;  %v1454_v56 = vpop.permute.xlu1 %1453 }
 0x2d3   :  { %v1399_v13 = vsel %vm653_vm9, %v1396_v11, %v1398_v23  ;;  %v1400_v29 = vsel %vm653_vm9, %v1398_v23, %v1396_v11  ;;  %vm3261_vm9 = vcmp.lt.s32.totalorder %v2090_v17, 45 }
 0x2d4   :  { %v1401_v28 = vadd.f32 %v1399_v13, %v1389_v55  ;;  %v1402_v60 = vadd.f32 %v1400_v29, %v1390_v19 }
 0x2d6   :  { %v1456_v45 = vpop.permute.xlu0 %1455  ;;  %v1464_v4 = vpop.permute.xlu1 %1463 }
 0x2d7   :  { %v1457_v27 = vsel %vm716_vm15, %v1454_v56, %v1456_v45  ;;  %v1458_v61 = vsel %vm716_vm15, %v1456_v45, %v1454_v56  ;;  %vm3265_vm15 = vcmp.lt.s32.totalorder %v2090_v17, 74 }
 0x2d8   :  { %vm3266_vm6 = vmmov %vm3265_vm15 }
 0x2da   :  { %v1466_v0 = vpop.permute.xlu0 %1465  ;;  %v1328_v36 = vpop.permute.xlu1 %1327 }
 0x2db   :  { %v1467_v16 = vsel %vm727_vm0, %v1464_v4, %v1466_v0  ;;  %v1468_v24 = vsel %vm727_vm0, %v1466_v0, %v1464_v4  ;;  %vm3262_vm0 = vmmov %vm3261_vm9 }
 0x2dc   :  { %v1469_v9 = vadd.f32 %v1467_v16, %v1457_v27  ;;  %v1470_v46 = vadd.f32 %v1468_v24, %v1458_v61 }
 0x2de   :  { %v1330_v5 = vpop.permute.xlu0 %1329  ;;  %v1408_v2 = vpop.permute.xlu1 %1407 }
 0x2df   :  { %v1331_v58 = vsel %vm3259_vm3, %v1328_v36, %v1330_v5  ;;  %v1332_v50 = vsel %vm3260_vm8, %v1330_v5, %v1328_v36  ;;  %vm3268_vm3 = vmmov %vm3267_vm11 }
 0x2e0   :  { %v1333_v52 = vadd.f32 %v1331_v58, %v1321_v21  ;;  %v1334_v35 = vadd.f32 %v1332_v50, %v1322_v22 }
 0x2e2   :  { %v1410_v43 = vpop.permute.xlu0 %1409  ;;  %v1476_v53 = vpop.permute.xlu1 %1475 }
 0x2e3   :  { %v1411_v48 = vsel %vm3261_vm9, %v1408_v2, %v1410_v43  ;;  %v1412_v15 = vsel %vm3262_vm0, %v1410_v43, %v1408_v2 }
 0x2e4   :  { %v1413_v23 = vadd.f32 %v1411_v48, %v1401_v28  ;;  %v1414_v56 = vadd.f32 %v1412_v15, %v1402_v60 }
 0x2e6   :  { %v1478_v26 = vpop.permute.xlu0 %1477  ;;  %v1336_v30 = vpop.permute.xlu1 %1335 }
 0x2e7   :  { %v1479_v0 = vsel %vm740_vm14, %v1476_v53, %v1478_v26  ;;  %v1480_v36 = vsel %vm740_vm14, %v1478_v26, %v1476_v53 }
 0x2e8   :  { %v1482_v8 = vadd.f32 %v1480_v36, %v1470_v46 }
 0x2ea   :  { %v1338_v3 = vpop.permute.xlu0 %1337  ;;  %v1420_v59 = vpop.permute.xlu1 %1419 }
 0x2eb   :  { %v1339_v6 = vsel %vm3263_vm5, %v1336_v30, %v1338_v3  ;;  %v1340_v47 = vsel %vm3264_vm4, %v1338_v3, %v1336_v30 }
 0x2ec   :  { %v1342_v30 = vadd.f32 %v1340_v47, %v1334_v35 }
 0x2ee   :  { %v1422_v14 = vpop.permute.xlu0 %1421  ;;  %v3063_v57 = vpop.permute.xlu1 %1487 }
 0x2ef   :  { %v1423_v5 = vsel %vm679_vm12, %v1420_v59, %v1422_v14  ;;  %v1424_v2 = vsel %vm679_vm12, %v1422_v14, %v1420_v59 }
 0x2f0   :  { %v1425_v14 = vadd.f32 %v1423_v5, %v1413_v23  ;;  %v1426_v37 = vadd.f32 %v1424_v2, %v1414_v56 }
 0x2f2   :  { %v3065_v39 = vpop.permute.xlu0 %1489  ;;  %v1350_v18 = vpop.permute.xlu1 %1349 }
 0x2f3   :  { %v1492_v24 = vsel %vm753_vm7, %v3065_v39, %v3063_v57 }
 0x2f6   :  { %v1352_v12 = vpop.permute.xlu0 %1351  ;;  %v1428_v63 = vpop.permute.xlu1 %1427 }
 0x2f7   :  { %v1353_v41 = vsel %vm3267_vm11, %v1350_v18, %v1352_v12  ;;  %v1354_v53 = vsel %vm3268_vm3, %v1352_v12, %v1350_v18 }
 0x2f8   :  { %v1356_v55 = vadd.f32 %v1354_v53, %v1342_v30 }
 0x2fa   :  { %v1430_v31 = vpop.permute.xlu0 %1429  ;;  %v3083_v1 = vpop.permute.xlu1 %1499 }
 0x2fb   :  { %v1431_v26 = vsel %vm688_vm10, %v1428_v63, %v1430_v31  ;;  %v1432_v59 = vsel %vm688_vm10, %v1430_v31, %v1428_v63  ;;  %v1491_v31 = vsel %vm753_vm7, %v3063_v57, %v3065_v39  ;;  %vm3271_vm10 = vcmp.lt.s32.totalorder %v2090_v17, 28 }
 0x2fc   :  { %v1433_v19 = vadd.f32 %v1431_v26, %v1425_v14  ;;  %v1434_v16 = vadd.f32 %v1432_v59, %v1426_v37  ;;  %vm3272_vm14 = vmmov %vm3271_vm10  ;;  %v1494_v39 = vadd.f32 %v1492_v24, %v1482_v8  ;;  %vm3273_vm7 = vcmp.lt.s32.totalorder %v2090_v17, 27 }
 0x2fe   :  { %v1502_v54 = vpop.permute.xlu0 %1501  ;;  %v1284_v33 = vpop.permute.xlu1 %1283 }
 0x2ff   :  { %v1285_v34 = vsel %vm3265_vm15, %v3053_v49, %v1284_v33  ;;  %v1286_v11 = vsel %vm3266_vm6, %v1284_v33, %v3053_v49  ;;  %v1341_v49 = vadd.f32 %v1339_v6, %v1333_v52  ;;  %v1503_v27 = vsel %vm3271_vm10, %v3083_v1, %v1502_v54 }
 0x300   :  { %v1287_v45 = vadd.f32 %v1285_v34, %v3049_v32  ;;  %v1288_v4 = vadd.f32 %v1286_v11, %v3051_v42  ;;  %v1504_v61 = vsel %vm3272_vm14, %v1502_v54, %v3083_v1 }
 0x301   :  { %v1355_v29 = vadd.f32 %v1353_v41, %v1341_v49  ;;  %v1506_v6 = vadd.f32 %v1504_v61, %v1494_v39 }
 0x302   :  { %v1362_v43 = vpop.permute.xlu0 %1361  ;;  %v1529_v3 = vadd.f32 %v1287_v45, %v2514_v20  ;;  %v1530_v32 = vadd.f32 %v1288_v4, %v2516_v44  ;;  %v1364_v42 = vpop.permute.xlu1 %1363  ;;  %v3270_v20 = vld [vmem:[#allocation15_spill] sm:$0xff]  ;;  %v1481_v44 = vadd.f32 %v1479_v0, %v1469_v9 }
 0x303   :  { %v1365_v13 = vsel %vm616_vm1, %v1362_v43, %v1364_v42  ;;  %v1366_v18 = vsel %vm616_vm1, %v1364_v42, %v1362_v43  ;;  %vm3275_vm1 = vcmp.lt.s32.totalorder %v2090_v17, 26 }
 0x304   :  { %v1533_v38 = vadd.f32 %v1529_v3, %v3269_v25  ;;  %v1534_v40 = vadd.f32 %v1530_v32, %v3270_v20  ;;  %v1367_v21 = vadd.f32 %v1365_v13, %v1355_v29  ;;  %v1368_v22 = vadd.f32 %v1366_v18, %v1356_v55  ;;  %vm3276_vm12 = vmmov %vm3275_vm1 }
 0x305   :  { %v1493_v57 = vadd.f32 %v1491_v31, %v1481_v44 }
 0x306   :  { %v1442_v12 = vpop.permute.xlu0 %1441  ;;  %v1444_v63 = vpop.permute.xlu1 %1443 }
 0x307   :  { %v1445_v58 = vsel %vm703_vm13, %v1442_v12, %v1444_v63  ;;  %v1446_v50 = vsel %vm703_vm13, %v1444_v63, %v1442_v12  ;;  %vm3274_vm13 = vmmov %vm3273_vm7  ;;  %v1505_v33 = vadd.f32 %v1503_v27, %v1493_v57 }
 0x308   :  { %v1447_v28 = vadd.f32 %v1445_v58, %v1433_v19  ;;  %v1448_v60 = vadd.f32 %v1446_v50, %v1434_v16 }
 0x30a   :  { %v1512_v48 = vpop.permute.xlu0 %1511  ;;  %v1531_v15 = vadd.f32 %v1447_v28, %v1367_v21  ;;  %v1532_v9 = vadd.f32 %v1448_v60, %v1368_v22  ;;  %v1514_v46 = vpop.permute.xlu1 %1513 }
 0x30b   :  { %v1515_v52 = vsel %vm3273_vm7, %v1512_v48, %v1514_v46  ;;  %v1516_v35 = vsel %vm3274_vm13, %v1514_v46, %v1512_v48 }
 0x30c   :  { %v1517_v34 = vadd.f32 %v1515_v52, %v1505_v33  ;;  %v1518_v11 = vadd.f32 %v1516_v35, %v1506_v6 }
 0x30e   :  { %v1520_v47 = vpop.permute.xlu0 %1519  ;;  %v1522_v23 = vpop.permute.xlu1 %1521 }
 0x30f   :  { %v1523_v1 = vsel %vm3275_vm1, %v1520_v47, %v1522_v23  ;;  %v1524_v54 = vsel %vm3276_vm12, %v1522_v23, %v1520_v47 }
 0x310   :  { %v1525_v56 = vadd.f32 %v1523_v1, %v1517_v34  ;;  %v1526_v45 = vadd.f32 %v1524_v54, %v1518_v11 }
 0x312   :  { %v1535_v4 = vadd.f32 %v1531_v15, %v1525_v56  ;;  %v1536_v0 = vadd.f32 %v1532_v9, %v1526_v45 }
 0x314   :  { %v1537_v36 = vadd.f32 %v1535_v4, %v1533_v38  ;;  %v1538_v5 = vadd.f32 %v1536_v0, %v1534_v40 }
 0x316   :  { %vm1539_vm8 = vcmp.gt.f32.partialorder %v1537_v36, %v3012_v62  ;;  %vm1540_vm9 = vcmp.gt.f32.partialorder %v1538_v5, %v3012_v62 }
 0x317   :  { %v1585_v2 = vsel %vm1539_vm8, 1.0, %v3246_v7  ;;  %v1586_v43 = vsel %vm1540_vm9, 1.0, %v3246_v7 }
 0x318   :  { %v1547_v49 = vcombine.low %v1585_v2, %v1586_v43 }
 0x31a   :  { %v1554_v17 = vrot.slane %v1547_v49, %v3022_v51 }
 0x31c   :  { %v1561_v30 = vrot.slane %v1554_v17, %v3022_v51 }
 0x31e   :  { %1564 = vst.msk [vmem:[#allocation8 + $0x2] sm:$0x3] %vm3038_vm2, %v1561_v30 }
 0x31f   :  { %1764 = shalt.err (!%p1761_p6)
}
 0x320   :  { %s1765_s0 = scalar_lea.hbm %s3188_s3, 64 }
 0x321   :  { %p1766_p7 = scmp.ne.s32.totalorder %s3188_s3, %s1765_s0  ;;  %p1769_p8 = scmp.lt.u32.totalorder %s1765_s0, %s3188_s3 }
 0x323   :  { %p1771_p9 = pnand %p1769_p8, %p1766_p7 }
 0x325   :  { %1774 = shalt.err (!%p1771_p9)
}
 0x326   :  { %s1838_s12 = smov 2  }
 0x327   :  { %1576 = dma.vmem_to_hbm [thread:$0]  %s1571_s5, 64, %s3188_s3, [#allocation5], %s1829_s23, %s1829_s23, %s1838_s12  }
 0x328   :  { %1779 = dma.done.wait [#allocation5], 64  }
 0x329   :  { %1780 = vsyncadd [#allocation5], 4294967232 }
 0x32a   :  { %1580 = vsyncpa [#allocation4], 1 }
 0x32b   :  { %1581 = vsyncpa [#allocation7], 1 }
 0x32c   :  { %1582 = vsyncpa [#allocation5], 1 }

</bundles_post_ra>
